<compile_context>
chip_gen: v5e
topology: v5e:2x2
jax: 0.10.0
libtpu: 0.0.40
codegen_flags: <defaults>
</compile_context>

<pallas_src>
import math

import jax
import jax.numpy as jnp
from jax.experimental import pallas as pl
from jax.experimental.pallas import tpu as pltpu


def _round_up(x, m):
    return ((x + m - 1) // m) * m


# ---------------------------------------------------------------------------
# Kernel
# ---------------------------------------------------------------------------
def local_embedding_kernel(x_ref, w1_ref, t1_ref, w2_ref, t2_ref, o_ref):
    # x_ref : (tile_mp, Kp)          streamed per grid step (Kp = 32*C_in = 128)
    # w1_ref: (Kp, Hp)   t1_ref: (1, Hp)   resident block-diag (index_map -> (0,0))
    # w2_ref: (Hp, Op)   t2_ref: (1, Op)   resident block-diag
    # o_ref : (tile_mp, Op)                Op = 32*C_out = 512 (lane-dense)
    x = x_ref[...]

    # Conv1d(k=1) #1 with BN1 folded in, then ReLU (block-diagonal -> per-row).
    h = jnp.dot(x, w1_ref[...], preferred_element_type=jnp.float32) + t1_ref[...]
    h = jnp.maximum(h, 0.0)

    # Conv1d(k=1) #2 with BN2 (affine=False) folded in.
    y = jnp.dot(h, w2_ref[...], preferred_element_type=jnp.float32) + t2_ref[...]

    o_ref[...] = y.astype(o_ref.dtype)


# ---------------------------------------------------------------------------
# Wrapper
# ---------------------------------------------------------------------------
def local_embedding(x, folded, *, tile_mp=1024):
    """x: (B, N, C_in) float32 -> (B, N, C_out).  `folded` from fold_params().

    tile_mp is the number of packed super-rows (repl=32 points each) per grid
    step; the default 1024 ~= 32768 points ~= 2.5 MiB HBM traffic per step.
    """
    B, N, C_in = x.shape
    w1 = folded["w1_bd"]   # (Kp, Hp) block-diagonal
    t1 = folded["t1_bd"]   # (1, Hp)
    w2 = folded["w2_bd"]   # (Hp, Op) block-diagonal
    t2 = folded["t2_bd"]   # (1, Op)
    repl = folded["repl"]
    C_out = folded["c_out"]

    Kp, Hp = w1.shape
    Op = w2.shape[1]
    assert Kp == repl * C_in

    M = B * N
    MP = pl.cdiv(M, repl)                       # super-rows needed
    # Block second-minor dim must be a multiple of 8 (or the full dim).
    tile_mp = max(8, min(tile_mp, _round_up(MP, 8)))
    MP_pad = _round_up(MP, tile_mp)
    M_pad = MP_pad * repl

    x2d = x.reshape(M, C_in)
    if M_pad != M:
        x2d = jnp.pad(x2d, ((0, M_pad - M), (0, 0)))
    xp = x2d.reshape(MP_pad, Kp)                # free row-major reinterpretation

    grid = (MP_pad // tile_mp,)

    flops = 2 * MP_pad * (Kp * Hp + Hp * Op)
    bytes_accessed = 4 * (MP_pad * (Kp + Op) + Kp * Hp + Hp * Op + Hp + Op)

    out_p = pl.pallas_call(
        local_embedding_kernel,
        out_shape=jax.ShapeDtypeStruct((MP_pad, Op), x.dtype),
        grid_spec=pltpu.PrefetchScalarGridSpec(
            num_scalar_prefetch=0,
            grid=grid,
            in_specs=[
                pl.BlockSpec((tile_mp, Kp), lambda i: (i, 0)),   # streamed x
                pl.BlockSpec((Kp, Hp), lambda i: (0, 0)),        # resident W1
                pl.BlockSpec((1, Hp), lambda i: (0, 0)),         # resident t1
                pl.BlockSpec((Hp, Op), lambda i: (0, 0)),        # resident W2
                pl.BlockSpec((1, Op), lambda i: (0, 0)),         # resident t2
            ],
            out_specs=pl.BlockSpec((tile_mp, Op), lambda i: (i, 0)),
        ),
        compiler_params=pltpu.CompilerParams(
            dimension_semantics=("parallel",),
            vmem_limit_bytes=48 * 1024 * 1024),
        cost_estimate=pl.CostEstimate(
            flops=flops, transcendentals=0, bytes_accessed=bytes_accessed),
    )(xp, w1, t1, w2, t2)

    out2d = out_p.reshape(M_pad, C_out)          # free reinterpretation
    if M_pad != M:
        out2d = out2d[:M]
    return out2d.reshape(B, N, C_out)


# ---------------------------------------------------------------------------
# Parameter construction / BN folding (wrapper-side glue, outside the kernel)
# ---------------------------------------------------------------------------
def make_params(key, input_dim, hidden_dim, output_dim):
    """Deterministic synthetic parameters matching the PyTorch module shapes."""
    ks = jax.random.split(key, 10)
    p = {}
    # Conv1d(input_dim, hidden_dim, 1): weight (H, C_in, 1) -> (H, C_in), bias (H,)
    p["conv1_w"] = jax.random.normal(ks[0], (hidden_dim, input_dim), jnp.float32) * 0.1
    p["conv1_b"] = jax.random.normal(ks[1], (hidden_dim,), jnp.float32) * 0.1
    # BatchNorm1d(hidden_dim)
    p["bn1_gamma"] = 1.0 + 0.1 * jax.random.normal(ks[2], (hidden_dim,), jnp.float32)
    p["bn1_beta"] = 0.1 * jax.random.normal(ks[3], (hidden_dim,), jnp.float32)
    p["bn1_mean"] = 0.1 * jax.random.normal(ks[4], (hidden_dim,), jnp.float32)
    p["bn1_var"] = jnp.abs(1.0 + 0.1 * jax.random.normal(ks[5], (hidden_dim,), jnp.float32))
    # Conv1d(hidden_dim, output_dim, 1)
    p["conv2_w"] = jax.random.normal(ks[6], (output_dim, hidden_dim), jnp.float32) * 0.1
    p["conv2_b"] = jax.random.normal(ks[7], (output_dim,), jnp.float32) * 0.1
    # BatchNorm1d(output_dim, affine=False): running stats only
    p["bn2_mean"] = 0.1 * jax.random.normal(ks[8], (output_dim,), jnp.float32)
    p["bn2_var"] = jnp.abs(1.0 + 0.1 * jax.random.normal(ks[9], (output_dim,), jnp.float32))
    return p


def fold_params(p, eps=1e-5):
    """Fold inference-mode BN into the pointwise-conv weights/biases, then
    replicate block-diagonally so the packed (M/repl, repl*C_in) layout is
    lane-dense (repl chosen so repl*C_in is a multiple of 128)."""
    s1 = p["bn1_gamma"] / jnp.sqrt(p["bn1_var"] + eps)          # (H,)
    b1 = p["bn1_beta"] - p["bn1_mean"] * s1                     # (H,)
    w1f = (p["conv1_w"] * s1[:, None]).T                        # (C_in, H)
    t1f = p["conv1_b"] * s1 + b1                                # (H,)

    s2 = 1.0 / jnp.sqrt(p["bn2_var"] + eps)                     # (C_out,)
    b2 = -p["bn2_mean"] * s2                                    # (C_out,)
    w2f = (p["conv2_w"] * s2[:, None]).T                        # (H, C_out)
    t2f = p["conv2_b"] * s2 + b2                                # (C_out,)

    C_in, H = w1f.shape
    C_out = w2f.shape[1]
    repl = math.lcm(128, C_in) // C_in                          # 32 for C_in=4

    eye = jnp.eye(repl, dtype=w1f.dtype)
    # w1_bd[r*C_in + c, s*H + h] = (r == s) * w1f[c, h]
    w1_bd = jnp.einsum("rs,ch->rcsh", eye, w1f).reshape(repl * C_in, repl * H)
    # w2_bd[r*H + h, s*C_out + o] = (r == s) * w2f[h, o]
    w2_bd = jnp.einsum("rs,ho->rhso", eye, w2f).reshape(repl * H, repl * C_out)
    t1_bd = jnp.tile(t1f, repl).reshape(1, repl * H)
    t2_bd = jnp.tile(t2f, repl).reshape(1, repl * C_out)

    return {"w1_bd": w1_bd, "t1_bd": t1_bd, "w2_bd": w2_bd, "t2_bd": t2_bd,
            "repl": repl, "c_out": C_out}


def local_embedding_ref(x, p, eps=1e-5):
    """Pure-JAX reference of the PyTorch forward (inference-mode BN), unfolded."""
    h = jnp.einsum("bnc,hc->bnh", x, p["conv1_w"]) + p["conv1_b"]
    h = (h - p["bn1_mean"]) / jnp.sqrt(p["bn1_var"] + eps) * p["bn1_gamma"] + p["bn1_beta"]
    h = jnp.maximum(h, 0.0)
    y = jnp.einsum("bnh,oh->bno", h, p["conv2_w"]) + p["conv2_b"]
    y = (y - p["bn2_mean"]) / jnp.sqrt(p["bn2_var"] + eps)
    return y


# ---------------------------------------------------------------------------
# Tests
# ---------------------------------------------------------------------------
if __name__ == "__main__":
    input_dim, hidden_dim, output_dim = 4, 32, 16
    key = jax.random.PRNGKey(0)
    kx1, kx2, kp = jax.random.split(key, 3)

    params = make_params(kp, input_dim, hidden_dim, output_dim)
    folded = fold_params(params)

    # Test 1: small shape (B=2, N=8) -> M=16 < repl, single grid step,
    # exercises the heavy-padding path.
    B, N = 2, 8
    x = jax.random.normal(kx1, (B, N, input_dim), jnp.float32)
    out = jax.block_until_ready(local_embedding(x, folded))
    ref = local_embedding_ref(x, params)
    assert out.shape == (B, N, output_dim)
    assert jnp.allclose(out, ref, rtol=1e-4, atol=1e-4), (
        float(jnp.max(jnp.abs(out - ref))))

    # Test 2: M=600 (not a multiple of repl=32), small tile -> multi-step grid.
    # MP = 19 -> tile_mp=8 -> MP_pad=24 -> grid=3; exercises padding + pipeline.
    B2, N2 = 2, 300
    x2 = jax.random.normal(kx2, (B2, N2, input_dim), jnp.float32)
    out2 = jax.block_until_ready(local_embedding(x2, folded, tile_mp=8))
    ref2 = local_embedding_ref(x2, params)
    assert out2.shape == (B2, N2, output_dim)
    assert jnp.allclose(out2, ref2, rtol=1e-4, atol=1e-4), (
        float(jnp.max(jnp.abs(out2 - ref2))))

    # Test 3: same non-multiple-of-32 M with the default (large) tile, which
    # gets clamped to the full (rounded-up) super-row extent -> single step.
    out3 = jax.block_until_ready(local_embedding(x2, folded))
    assert jnp.allclose(out3, ref2, rtol=1e-4, atol=1e-4), (
        float(jnp.max(jnp.abs(out3 - ref2))))

    print("KERNEL_OK")
</pallas_src>

<mosaic_0001>
module attributes {stable_mosaic.version = 11 : i64} {
  func.func @local_embedding_kernel(%arg0: i32, %arg1: memref<8x128xf32, #tpu.memory_space<vmem>>, %arg2: memref<128x1024xf32, #tpu.memory_space<vmem>>, %arg3: memref<1x1024xf32, #tpu.memory_space<vmem>>, %arg4: memref<1024x512xf32, #tpu.memory_space<vmem>>, %arg5: memref<1x512xf32, #tpu.memory_space<vmem>>, %arg6: memref<8x512xf32, #tpu.memory_space<vmem>>) attributes {dimension_semantics = [#tpu.dimension_semantics<parallel>], iteration_bounds = array<i64: 1>, scalar_prefetch = 0 : i64, scratch_operands = 0 : i64, tpu.core_type = #tpu.core_type<tc>, window_params = [{transform_indices = @transform_0, window_bounds = array<i64: 8, 128>}, {pipeline_mode = #tpu.pipeline_mode<synchronous>, transform_indices = @transform_1, window_bounds = array<i64: 128, 1024>}, {pipeline_mode = #tpu.pipeline_mode<synchronous>, transform_indices = @transform_2, window_bounds = array<i64: 1, 1024>}, {pipeline_mode = #tpu.pipeline_mode<synchronous>, transform_indices = @transform_3, window_bounds = array<i64: 1024, 512>}, {pipeline_mode = #tpu.pipeline_mode<synchronous>, transform_indices = @transform_4, window_bounds = array<i64: 1, 512>}, {transform_indices = @transform_5, window_bounds = array<i64: 8, 512>}]} {
    %c0 = arith.constant 0 : index
    %c0_0 = arith.constant 0 : index
    %0 = vector.load %arg1[%c0, %c0_0] : memref<8x128xf32, #tpu.memory_space<vmem>>, vector<8x128xf32>
    %c0_1 = arith.constant 0 : index
    %c0_2 = arith.constant 0 : index
    %1 = vector.load %arg2[%c0_1, %c0_2] : memref<128x1024xf32, #tpu.memory_space<vmem>>, vector<128x1024xf32>
    %cst = arith.constant dense<0.000000e+00> : vector<8x1024xf32>
    %2 = tpu.matmul %0, %1, %cst {dimension_numbers = #tpu.dot_dimension_numbers<[1], [0], [0], [1], [0, 0, 1, 1], [], []>} : vector<8x128xf32>, vector<128x1024xf32>, vector<8x1024xf32> -> vector<8x1024xf32>
    %c0_3 = arith.constant 0 : index
    %c0_4 = arith.constant 0 : index
    %3 = vector.load %arg3[%c0_3, %c0_4] : memref<1x1024xf32, #tpu.memory_space<vmem>>, vector<1x1024xf32>
    %4 = vector.broadcast %3 : vector<1x1024xf32> to vector<8x1024xf32>
    %5 = arith.addf %2, %4 : vector<8x1024xf32>
    %cst_5 = arith.constant 0.000000e+00 : f32
    %6 = vector.broadcast %cst_5 : f32 to vector<8x1024xf32>
    %7 = arith.maximumf %5, %6 : vector<8x1024xf32>
    %c0_6 = arith.constant 0 : index
    %c0_7 = arith.constant 0 : index
    %8 = vector.load %arg4[%c0_6, %c0_7] : memref<1024x512xf32, #tpu.memory_space<vmem>>, vector<1024x512xf32>
    %cst_8 = arith.constant dense<0.000000e+00> : vector<8x512xf32>
    %9 = tpu.matmul %7, %8, %cst_8 {dimension_numbers = #tpu.dot_dimension_numbers<[1], [0], [0], [1], [0, 0, 1, 1], [], []>} : vector<8x1024xf32>, vector<1024x512xf32>, vector<8x512xf32> -> vector<8x512xf32>
    %c0_9 = arith.constant 0 : index
    %c0_10 = arith.constant 0 : index
    %10 = vector.load %arg5[%c0_9, %c0_10] : memref<1x512xf32, #tpu.memory_space<vmem>>, vector<1x512xf32>
    %11 = vector.broadcast %10 : vector<1x512xf32> to vector<8x512xf32>
    %12 = arith.addf %9, %11 : vector<8x512xf32>
    %c0_11 = arith.constant 0 : index
    %c0_12 = arith.constant 0 : index
    %13 = vector.load %arg6[%c0_11, %c0_12] : memref<8x512xf32, #tpu.memory_space<vmem>>, vector<8x512xf32>
    tpu.vector_store %arg6[%c0_11, %c0_12], %12 {strides = array<i32>} : memref<8x512xf32, #tpu.memory_space<vmem>>, vector<8x512xf32>,
    return
  }
  func.func @transform_0(%arg0: i32) -> (i32, i32) {
    %c0_i32 = arith.constant 0 : i32
    %c0_i32_0 = arith.constant 0 : i32
    return %arg0, %c0_i32 : i32, i32
  }
  func.func @transform_1(%arg0: i32) -> (i32, i32) {
    %c0_i32 = arith.constant 0 : i32
    %c0_i32_0 = arith.constant 0 : i32
    %c0_i32_1 = arith.constant 0 : i32
    return %c0_i32, %c0_i32_0 : i32, i32
  }
  func.func @transform_2(%arg0: i32) -> (i32, i32) {
    %c0_i32 = arith.constant 0 : i32
    %c0_i32_0 = arith.constant 0 : i32
    %c0_i32_1 = arith.constant 0 : i32
    return %c0_i32, %c0_i32_0 : i32, i32
  }
  func.func @transform_3(%arg0: i32) -> (i32, i32) {
    %c0_i32 = arith.constant 0 : i32
    %c0_i32_0 = arith.constant 0 : i32
    %c0_i32_1 = arith.constant 0 : i32
    return %c0_i32, %c0_i32_0 : i32, i32
  }
  func.func @transform_4(%arg0: i32) -> (i32, i32) {
    %c0_i32 = arith.constant 0 : i32
    %c0_i32_0 = arith.constant 0 : i32
    %c0_i32_1 = arith.constant 0 : i32
    return %c0_i32, %c0_i32_0 : i32, i32
  }
  func.func @transform_5(%arg0: i32) -> (i32, i32) {
    %c0_i32 = arith.constant 0 : i32
    %c0_i32_0 = arith.constant 0 : i32
    return %arg0, %c0_i32 : i32, i32
  }
}

</mosaic_0001>

<bundles_post_ra>
// kernel: tpu_custom_call.1
= control target key start
LH: loop header
LB: loop body
LE: loop exit
PB: predicated region body
PF: predicated region fallthrough
CT: control target
= control target key end

     0   :  { %10 = vsyncpa [#allocation3], 0  ;;  %s1887_s0 = inlined_call_operand.hbm [shape: f32[8,128], index: 0, kind: input, shape index: {}]   ;;  %s1888_s1 = inlined_call_operand.hbm [shape: f32[128,1024], index: 1, kind: input, shape index: {}]   ;;  %s1889_s2 = inlined_call_operand.hbm [shape: f32[1,1024], index: 2, kind: input, shape index: {}]   ;;  %s1890_s3 = inlined_call_operand.hbm [shape: f32[1024,512], index: 3, kind: input, shape index: {}]   ;;  %s1891_s4 = inlined_call_operand.hbm [shape: f32[1,512], index: 4, kind: input, shape index: {}]   ;;  %s1892_s5 = inlined_call_operand.hbm [shape: f32[8,512], index: 5, kind: output, shape index: {}]  }
   0x1   :  { %11 = vsyncpa [#allocation6], 0 }
   0x2   :  { %12 = vsyncpa [#allocation9], 0  ;;  %s29_s20 = sshll.u32 %s1888_s1, 4  ;;  %s30_s20 = int_to_ptr.hbm [resolvable:$true] %s29_s20 }
   0x3   :  { %13 = vsyncpa [#allocation4], 0  ;;  %s1755_s21 = smov [#allocation5]   ;;  %s53_s25 = sshll.u32 %s1890_s3, 4  ;;  %s54_s25 = int_to_ptr.hbm [resolvable:$true] %s53_s25 }
   0x4   :  { %s31_s22 = sshll.u32 %s1755_s21, 4  ;;  %s1756_s26 = smov 1024   ;;  %s32_s22 = int_to_ptr.vmem [resolvable:$true] %s31_s22 }
   0x5   :  { %s1757_s27 = smov 64   ;;  %s1758_s28 = smov [#allocation8]  }
   0x6   :  { %37 = dma.hbm_to_vmem [thread:$0]  %s30_s20, 16384, %s32_s22, [#allocation6], %s1756_s26, %s1756_s26, %s1757_s27  }
   0x7   :  { %s55_s29 = sshll.u32 %s1758_s28, 4  ;;  %s1759_s30 = smov 512   ;;  %s56_s29 = int_to_ptr.vmem [resolvable:$true] %s55_s29 }
   0x8   :  { %s1760_s6 = smov 32   ;;  %s19_s8 = sshll.u32 %s1887_s0, 4  ;;  %s20_s8 = int_to_ptr.hbm [resolvable:$true] %s19_s8 }
   0x9   :  { %61 = dma.hbm_to_vmem [thread:$0]  %s54_s25, 65536, %s56_s29, [#allocation9], %s1759_s30, %s1759_s30, %s1760_s6  }
   0xa   :  { %s1761_s9 = smov [#allocation2]   ;;  %s43_s12 = sshll.u32 %s1889_s2, 4  ;;  %s44_s12 = int_to_ptr.hbm [resolvable:$true] %s43_s12 }
   0xb   :  { %s21_s10 = sshll.u32 %s1761_s9, 4  ;;  %s1762_s13 = smov [#allocation7]   ;;  %s22_s10 = int_to_ptr.vmem [resolvable:$true] %s21_s10 }
   0xc   :  { %24 = dma.hbm_to_vmem [thread:$0]  %s20_s8, 128, %s22_s10, [#allocation3]  }
   0xd   :  { %s45_s14 = sshll.u32 %s1762_s13, 4  ;;  %s67_s17 = sshll.u32 %s1891_s4, 4  ;;  %s46_s14 = int_to_ptr.vmem [resolvable:$true] %s45_s14  ;;  %s68_s17 = int_to_ptr.hbm [resolvable:$true] %s67_s17 }
   0xe   :  { %48 = dma.hbm_to_vmem [thread:$0]  %s44_s12, 128, %s46_s14, [#allocation6]  }
   0xf   :  { %s1763_s0 = smov [#allocation10]  }
  0x10   :  { %s69_s18 = sshll.u32 %s1763_s0, 4  ;;  %s70_s18 = int_to_ptr.vmem [resolvable:$true] %s69_s18 }
  0x11   :  { %72 = dma.hbm_to_vmem [thread:$0]  %s68_s17, 64, %s70_s18, [#allocation9]  }
  0x12   :  { %1747 = dma.done.wait [#allocation3], 128  }
  0x13   :  { %1748 = vsyncadd [#allocation3], 4294967168 }
  0x14   :  { %1749 = dma.done.wait [#allocation6], 16512  }
  0x15   :  { %1750 = vsyncadd [#allocation6], 4294950784 }
  0x16   :  { %1751 = dma.done.wait [#allocation9], 65600  }
  0x17   :  { %1752 = vsyncadd [#allocation9], 4294901696  ;;  %v214_v0 = vld [vmem:[#allocation5 + $0x3c0] sm:$0xff]  ;;  %v215_v1 = vld [vmem:[#allocation5 + $0x3c8] sm:$0xff]  ;;  %s1764_s2 = smov [#allocation11]   ;;  %s1581_s21 = sshll.u32 %s1892_s5, 4  ;;  %s1582_s21 = int_to_ptr.hbm [resolvable:$true] %s1581_s21 }
  0x18   :  { %v216_v2 = vld [vmem:[#allocation5 + $0x3d0] sm:$0xff]  ;;  %240 = vmatpush.msra.mxu0 %v214_v0  ;;  %260 = vmatpush.msra.mxu1 %v215_v1  ;;  %v217_v3 = vld [vmem:[#allocation5 + $0x3d8] sm:$0xff]  ;;  %v206_v4 = vld [vmem:[#allocation5 + $0x380] sm:$0xff]  ;;  %s1579_s4 = sshll.u32 %s1764_s2, 4  ;;  %s1580_s4 = int_to_ptr.vmem [resolvable:$true] %s1579_s4 }
  0x19   :  { %v207_v5 = vld [vmem:[#allocation5 + $0x388] sm:$0xff]  ;;  %280 = vmatpush.msra.mxu2 %v216_v2  ;;  %300 = vmatpush.msra.mxu3 %v217_v3  ;;  %v208_v6 = vld [vmem:[#allocation5 + $0x390] sm:$0xff]  ;;  %v209_v7 = vld [vmem:[#allocation5 + $0x398] sm:$0xff] }
  0x1a   :  { %v198_v8 = vld [vmem:[#allocation5 + $0x340] sm:$0xff]  ;;  %241 = vmatpush.msra.mxu0 %v206_v4  ;;  %261 = vmatpush.msra.mxu1 %v207_v5  ;;  %v199_v9 = vld [vmem:[#allocation5 + $0x348] sm:$0xff]  ;;  %v200_v10 = vld [vmem:[#allocation5 + $0x350] sm:$0xff] }
  0x1b   :  { %v201_v11 = vld [vmem:[#allocation5 + $0x358] sm:$0xff]  ;;  %281 = vmatpush.msra.mxu2 %v208_v6  ;;  %301 = vmatpush.msra.mxu3 %v209_v7  ;;  %v190_v12 = vld [vmem:[#allocation5 + $0x300] sm:$0xff]  ;;  %v191_v13 = vld [vmem:[#allocation5 + $0x308] sm:$0xff] }
  0x1c   :  { %242 = vmatpush.msra.mxu0 %v198_v8  ;;  %262 = vmatpush.msra.mxu1 %v199_v9  ;;  %v192_v14 = vld [vmem:[#allocation5 + $0x310] sm:$0xff]  ;;  %v193_v15 = vld [vmem:[#allocation5 + $0x318] sm:$0xff]  ;;  %v182_v16 = vld [vmem:[#allocation5 + $0x2c0] sm:$0xff] }
  0x1d   :  { %282 = vmatpush.msra.mxu2 %v200_v10  ;;  %302 = vmatpush.msra.mxu3 %v201_v11  ;;  %v183_v17 = vld [vmem:[#allocation5 + $0x2c8] sm:$0xff]  ;;  %v184_v18 = vld [vmem:[#allocation5 + $0x2d0] sm:$0xff]  ;;  %v185_v19 = vld [vmem:[#allocation5 + $0x2d8] sm:$0xff] }
  0x1e   :  { %243 = vmatpush.msra.mxu0 %v190_v12  ;;  %263 = vmatpush.msra.mxu1 %v191_v13  ;;  %v174_v20 = vld [vmem:[#allocation5 + $0x280] sm:$0xff]  ;;  %v175_v21 = vld [vmem:[#allocation5 + $0x288] sm:$0xff]  ;;  %v176_v22 = vld [vmem:[#allocation5 + $0x290] sm:$0xff] }
  0x1f   :  { %283 = vmatpush.msra.mxu2 %v192_v14  ;;  %303 = vmatpush.msra.mxu3 %v193_v15  ;;  %v177_v23 = vld [vmem:[#allocation5 + $0x298] sm:$0xff]  ;;  %v166_v24 = vld [vmem:[#allocation5 + $0x240] sm:$0xff]  ;;  %v167_v25 = vld [vmem:[#allocation5 + $0x248] sm:$0xff] }
  0x20   :  { %244 = vmatpush.msra.mxu0 %v182_v16  ;;  %264 = vmatpush.msra.mxu1 %v183_v17  ;;  %v168_v26 = vld [vmem:[#allocation5 + $0x250] sm:$0xff]  ;;  %v169_v27 = vld [vmem:[#allocation5 + $0x258] sm:$0xff]  ;;  %v158_v28 = vld [vmem:[#allocation5 + $0x200] sm:$0xff] }
  0x21   :  { %284 = vmatpush.msra.mxu2 %v184_v18  ;;  %304 = vmatpush.msra.mxu3 %v185_v19  ;;  %v159_v29 = vld [vmem:[#allocation5 + $0x208] sm:$0xff]  ;;  %v160_v30 = vld [vmem:[#allocation5 + $0x210] sm:$0xff]  ;;  %v161_v31 = vld [vmem:[#allocation5 + $0x218] sm:$0xff] }
  0x22   :  { %245 = vmatpush.msra.mxu0 %v174_v20  ;;  %265 = vmatpush.msra.mxu1 %v175_v21  ;;  %v150_v32 = vld [vmem:[#allocation5 + $0x1c0] sm:$0xff]  ;;  %v151_v33 = vld [vmem:[#allocation5 + $0x1c8] sm:$0xff]  ;;  %v152_v34 = vld [vmem:[#allocation5 + $0x1d0] sm:$0xff] }
  0x23   :  { %285 = vmatpush.msra.mxu2 %v176_v22  ;;  %305 = vmatpush.msra.mxu3 %v177_v23  ;;  %v153_v35 = vld [vmem:[#allocation5 + $0x1d8] sm:$0xff]  ;;  %v142_v36 = vld [vmem:[#allocation5 + $0x180] sm:$0xff]  ;;  %v143_v37 = vld [vmem:[#allocation5 + $0x188] sm:$0xff] }
  0x24   :  { %246 = vmatpush.msra.mxu0 %v166_v24  ;;  %266 = vmatpush.msra.mxu1 %v167_v25  ;;  %v144_v38 = vld [vmem:[#allocation5 + $0x190] sm:$0xff]  ;;  %v145_v39 = vld [vmem:[#allocation5 + $0x198] sm:$0xff]  ;;  %v134_v40 = vld [vmem:[#allocation5 + $0x140] sm:$0xff] }
  0x25   :  { %286 = vmatpush.msra.mxu2 %v168_v26  ;;  %306 = vmatpush.msra.mxu3 %v169_v27  ;;  %v135_v41 = vld [vmem:[#allocation5 + $0x148] sm:$0xff]  ;;  %v136_v42 = vld [vmem:[#allocation5 + $0x150] sm:$0xff]  ;;  %v137_v43 = vld [vmem:[#allocation5 + $0x158] sm:$0xff] }
  0x26   :  { %247 = vmatpush.msra.mxu0 %v158_v28  ;;  %267 = vmatpush.msra.mxu1 %v159_v29  ;;  %v126_v44 = vld [vmem:[#allocation5 + $0x100] sm:$0xff]  ;;  %v127_v45 = vld [vmem:[#allocation5 + $0x108] sm:$0xff]  ;;  %v128_v46 = vld [vmem:[#allocation5 + $0x110] sm:$0xff] }
  0x27   :  { %287 = vmatpush.msra.mxu2 %v160_v30  ;;  %307 = vmatpush.msra.mxu3 %v161_v31  ;;  %v129_v47 = vld [vmem:[#allocation5 + $0x118] sm:$0xff]  ;;  %v118_v48 = vld [vmem:[#allocation5 + $0xc0] sm:$0xff]  ;;  %v119_v49 = vld [vmem:[#allocation5 + $0xc8] sm:$0xff] }
  0x28   :  { %248 = vmatpush.msra.mxu0 %v150_v32  ;;  %268 = vmatpush.msra.mxu1 %v151_v33  ;;  %v120_v50 = vld [vmem:[#allocation5 + $0xd0] sm:$0xff]  ;;  %v121_v51 = vld [vmem:[#allocation5 + $0xd8] sm:$0xff]  ;;  %v110_v52 = vld [vmem:[#allocation5 + $0x80] sm:$0xff] }
  0x29   :  { %288 = vmatpush.msra.mxu2 %v152_v34  ;;  %308 = vmatpush.msra.mxu3 %v153_v35  ;;  %v111_v53 = vld [vmem:[#allocation5 + $0x88] sm:$0xff]  ;;  %v112_v54 = vld [vmem:[#allocation5 + $0x90] sm:$0xff]  ;;  %v113_v55 = vld [vmem:[#allocation5 + $0x98] sm:$0xff] }
  0x2a   :  { %249 = vmatpush.msra.mxu0 %v142_v36  ;;  %269 = vmatpush.msra.mxu1 %v143_v37  ;;  %v102_v56 = vld [vmem:[#allocation5 + $0x40] sm:$0xff]  ;;  %v103_v57 = vld [vmem:[#allocation5 + $0x48] sm:$0xff]  ;;  %v104_v58 = vld [vmem:[#allocation5 + $0x50] sm:$0xff] }
  0x2b   :  { %289 = vmatpush.msra.mxu2 %v144_v38  ;;  %309 = vmatpush.msra.mxu3 %v145_v39  ;;  %v105_v59 = vld [vmem:[#allocation5 + $0x58] sm:$0xff]  ;;  %v94_v60 = vld [vmem:[#allocation5] sm:$0xff]  ;;  %v95_v61 = vld [vmem:[#allocation5 + $0x8] sm:$0xff] }
  0x2c   :  { %250 = vmatpush.msra.mxu0 %v134_v40  ;;  %270 = vmatpush.msra.mxu1 %v135_v41  ;;  %v96_v62 = vld [vmem:[#allocation5 + $0x10] sm:$0xff]  ;;  %v97_v63 = vld [vmem:[#allocation5 + $0x18] sm:$0xff]  ;;  %v218_v1 = vld [vmem:[#allocation5 + $0x3e0] sm:$0xff] }
  0x2d   :  { %290 = vmatpush.msra.mxu2 %v136_v42  ;;  %310 = vmatpush.msra.mxu3 %v137_v43  ;;  %v1810_v0 = vld [vmem:[#allocation2] sm:$0xff]  ;;  %v219_v2 = vld [vmem:[#allocation5 + $0x3e8] sm:$0xff]  ;;  %v220_v3 = vld [vmem:[#allocation5 + $0x3f0] sm:$0xff] }
  0x2e   :  { %251 = vmatpush.msra.mxu0 %v126_v44  ;;  %271 = vmatpush.msra.mxu1 %v127_v45  ;;  %v221_v4 = vld [vmem:[#allocation5 + $0x3f8] sm:$0xff]  ;;  %v210_v5 = vld [vmem:[#allocation5 + $0x3a0] sm:$0xff]  ;;  %v211_v6 = vld [vmem:[#allocation5 + $0x3a8] sm:$0xff] }
  0x2f   :  { %291 = vmatpush.msra.mxu2 %v128_v46  ;;  %311 = vmatpush.msra.mxu3 %v129_v47  ;;  %v212_v7 = vld [vmem:[#allocation5 + $0x3b0] sm:$0xff]  ;;  %v213_v8 = vld [vmem:[#allocation5 + $0x3b8] sm:$0xff]  ;;  %v202_v9 = vld [vmem:[#allocation5 + $0x360] sm:$0xff] }
  0x30   :  { %252 = vmatpush.msra.mxu0 %v118_v48  ;;  %272 = vmatpush.msra.mxu1 %v119_v49  ;;  %v203_v10 = vld [vmem:[#allocation5 + $0x368] sm:$0xff]  ;;  %v204_v11 = vld [vmem:[#allocation5 + $0x370] sm:$0xff]  ;;  %v205_v12 = vld [vmem:[#allocation5 + $0x378] sm:$0xff] }
  0x31   :  { %292 = vmatpush.msra.mxu2 %v120_v50  ;;  %312 = vmatpush.msra.mxu3 %v121_v51  ;;  %v194_v13 = vld [vmem:[#allocation5 + $0x320] sm:$0xff]  ;;  %v195_v14 = vld [vmem:[#allocation5 + $0x328] sm:$0xff]  ;;  %v196_v15 = vld [vmem:[#allocation5 + $0x330] sm:$0xff] }
  0x32   :  { %253 = vmatpush.msra.mxu0 %v110_v52  ;;  %273 = vmatpush.msra.mxu1 %v111_v53  ;;  %v197_v16 = vld [vmem:[#allocation5 + $0x338] sm:$0xff]  ;;  %v186_v17 = vld [vmem:[#allocation5 + $0x2e0] sm:$0xff]  ;;  %v187_v18 = vld [vmem:[#allocation5 + $0x2e8] sm:$0xff] }
  0x33   :  { %293 = vmatpush.msra.mxu2 %v112_v54  ;;  %313 = vmatpush.msra.mxu3 %v113_v55  ;;  %v188_v19 = vld [vmem:[#allocation5 + $0x2f0] sm:$0xff]  ;;  %v189_v20 = vld [vmem:[#allocation5 + $0x2f8] sm:$0xff]  ;;  %v178_v21 = vld [vmem:[#allocation5 + $0x2a0] sm:$0xff] }
  0x34   :  { %254 = vmatpush.msra.mxu0 %v102_v56  ;;  %274 = vmatpush.msra.mxu1 %v103_v57  ;;  %v179_v22 = vld [vmem:[#allocation5 + $0x2a8] sm:$0xff]  ;;  %v180_v23 = vld [vmem:[#allocation5 + $0x2b0] sm:$0xff]  ;;  %v181_v24 = vld [vmem:[#allocation5 + $0x2b8] sm:$0xff] }
  0x35   :  { %294 = vmatpush.msra.mxu2 %v104_v58  ;;  %314 = vmatpush.msra.mxu3 %v105_v59  ;;  %v170_v25 = vld [vmem:[#allocation5 + $0x260] sm:$0xff]  ;;  %v171_v26 = vld [vmem:[#allocation5 + $0x268] sm:$0xff]  ;;  %v172_v27 = vld [vmem:[#allocation5 + $0x270] sm:$0xff] }
  0x36   :  { %255 = vmatpush.msra.mxu0 %v94_v60  ;;  %275 = vmatpush.msra.mxu1 %v95_v61  ;;  %v173_v28 = vld [vmem:[#allocation5 + $0x278] sm:$0xff]  ;;  %v162_v29 = vld [vmem:[#allocation5 + $0x220] sm:$0xff]  ;;  %v163_v30 = vld [vmem:[#allocation5 + $0x228] sm:$0xff] }
  0x37   :  { %295 = vmatpush.msra.mxu2 %v96_v62  ;;  %315 = vmatpush.msra.mxu3 %v97_v63  ;;  %v164_v31 = vld [vmem:[#allocation5 + $0x230] sm:$0xff]  ;;  %v165_v32 = vld [vmem:[#allocation5 + $0x238] sm:$0xff]  ;;  %v154_v33 = vld [vmem:[#allocation5 + $0x1e0] sm:$0xff] }
  0x38   :  { %256 = vmatmul.f32.vlgmr.msra.gmra.mxu0 %v1810_v0  ;;  %276 = vmatmul.f32.vlgmr.msra.gmra.mxu1 %v1810_v0  ;;  %v155_v34 = vld [vmem:[#allocation5 + $0x1e8] sm:$0xff]  ;;  %v156_v35 = vld [vmem:[#allocation5 + $0x1f0] sm:$0xff]  ;;  %v157_v36 = vld [vmem:[#allocation5 + $0x1f8] sm:$0xff] }
  0x39   :  { %296 = vmatmul.f32.vlgmr.msra.gmra.mxu2 %v1810_v0  ;;  %316 = vmatmul.f32.vlgmr.msra.gmra.mxu3 %v1810_v0  ;;  %v146_v37 = vld [vmem:[#allocation5 + $0x1a0] sm:$0xff]  ;;  %v147_v38 = vld [vmem:[#allocation5 + $0x1a8] sm:$0xff]  ;;  %v148_v39 = vld [vmem:[#allocation5 + $0x1b0] sm:$0xff] }
  0x3a   :  { %320 = vmatpush.msrb.mxu0 %v218_v1  ;;  %340 = vmatpush.msrb.mxu1 %v219_v2  ;;  %v149_v40 = vld [vmem:[#allocation5 + $0x1b8] sm:$0xff]  ;;  %v138_v41 = vld [vmem:[#allocation5 + $0x160] sm:$0xff]  ;;  %v139_v42 = vld [vmem:[#allocation5 + $0x168] sm:$0xff] }
  0x3b   :  { %360 = vmatpush.msrb.mxu2 %v220_v3  ;;  %380 = vmatpush.msrb.mxu3 %v221_v4  ;;  %v140_v43 = vld [vmem:[#allocation5 + $0x170] sm:$0xff]  ;;  %v141_v44 = vld [vmem:[#allocation5 + $0x178] sm:$0xff]  ;;  %v130_v45 = vld [vmem:[#allocation5 + $0x120] sm:$0xff] }
  0x3c   :  { %321 = vmatpush.msrb.mxu0 %v210_v5  ;;  %341 = vmatpush.msrb.mxu1 %v211_v6  ;;  %v131_v46 = vld [vmem:[#allocation5 + $0x128] sm:$0xff]  ;;  %v132_v47 = vld [vmem:[#allocation5 + $0x130] sm:$0xff]  ;;  %v133_v48 = vld [vmem:[#allocation5 + $0x138] sm:$0xff] }
  0x3d   :  { %361 = vmatpush.msrb.mxu2 %v212_v7  ;;  %381 = vmatpush.msrb.mxu3 %v213_v8  ;;  %v122_v49 = vld [vmem:[#allocation5 + $0xe0] sm:$0xff]  ;;  %v123_v50 = vld [vmem:[#allocation5 + $0xe8] sm:$0xff]  ;;  %v124_v51 = vld [vmem:[#allocation5 + $0xf0] sm:$0xff] }
  0x3e   :  { %322 = vmatpush.msrb.mxu0 %v202_v9  ;;  %342 = vmatpush.msrb.mxu1 %v203_v10  ;;  %v125_v52 = vld [vmem:[#allocation5 + $0xf8] sm:$0xff]  ;;  %v114_v53 = vld [vmem:[#allocation5 + $0xa0] sm:$0xff]  ;;  %v115_v54 = vld [vmem:[#allocation5 + $0xa8] sm:$0xff] }
  0x3f   :  { %362 = vmatpush.msrb.mxu2 %v204_v11  ;;  %382 = vmatpush.msrb.mxu3 %v205_v12  ;;  %v116_v55 = vld [vmem:[#allocation5 + $0xb0] sm:$0xff]  ;;  %v117_v56 = vld [vmem:[#allocation5 + $0xb8] sm:$0xff]  ;;  %v106_v57 = vld [vmem:[#allocation5 + $0x60] sm:$0xff] }
  0x40   :  { %323 = vmatpush.msrb.mxu0 %v194_v13  ;;  %343 = vmatpush.msrb.mxu1 %v195_v14  ;;  %v107_v58 = vld [vmem:[#allocation5 + $0x68] sm:$0xff]  ;;  %v108_v59 = vld [vmem:[#allocation5 + $0x70] sm:$0xff]  ;;  %v109_v60 = vld [vmem:[#allocation5 + $0x78] sm:$0xff] }
  0x41   :  { %363 = vmatpush.msrb.mxu2 %v196_v15  ;;  %383 = vmatpush.msrb.mxu3 %v197_v16  ;;  %v98_v61 = vld [vmem:[#allocation5 + $0x20] sm:$0xff]  ;;  %v99_v62 = vld [vmem:[#allocation5 + $0x28] sm:$0xff]  ;;  %v100_v63 = vld [vmem:[#allocation5 + $0x30] sm:$0xff] }
  0x42   :  { %324 = vmatpush.msrb.mxu0 %v186_v17  ;;  %344 = vmatpush.msrb.mxu1 %v187_v18  ;;  %v101_v1 = vld [vmem:[#allocation5 + $0x38] sm:$0xff]  ;;  %v468_v2 = vld [vmem:[#allocation8 + $0x1e0] sm:$0xff] }
  0x43   :  { %364 = vmatpush.msrb.mxu2 %v188_v19  ;;  %384 = vmatpush.msrb.mxu3 %v189_v20  ;;  %v532_v3 = vld [vmem:[#allocation8 + $0x3e0] sm:$0xff] }
  0x44   :  { %325 = vmatpush.msrb.mxu0 %v178_v21  ;;  %345 = vmatpush.msrb.mxu1 %v179_v22  ;;  %v596_v4 = vld [vmem:[#allocation8 + $0x5e0] sm:$0xff] }
  0x45   :  { %365 = vmatpush.msrb.mxu2 %v180_v23  ;;  %385 = vmatpush.msrb.mxu3 %v181_v24  ;;  %v660_v5 = vld [vmem:[#allocation8 + $0x7e0] sm:$0xff] }
  0x46   :  { %326 = vmatpush.msrb.mxu0 %v170_v25  ;;  %346 = vmatpush.msrb.mxu1 %v171_v26  ;;  %v464_v6 = vld [vmem:[#allocation8 + $0x1c0] sm:$0xff] }
  0x47   :  { %366 = vmatpush.msrb.mxu2 %v172_v27  ;;  %386 = vmatpush.msrb.mxu3 %v173_v28  ;;  %v528_v7 = vld [vmem:[#allocation8 + $0x3c0] sm:$0xff] }
  0x48   :  { %327 = vmatpush.msrb.mxu0 %v162_v29  ;;  %347 = vmatpush.msrb.mxu1 %v163_v30  ;;  %v592_v8 = vld [vmem:[#allocation8 + $0x5c0] sm:$0xff] }
  0x49   :  { %367 = vmatpush.msrb.mxu2 %v164_v31  ;;  %387 = vmatpush.msrb.mxu3 %v165_v32  ;;  %v656_v9 = vld [vmem:[#allocation8 + $0x7c0] sm:$0xff] }
  0x4a   :  { %328 = vmatpush.msrb.mxu0 %v154_v33  ;;  %348 = vmatpush.msrb.mxu1 %v155_v34  ;;  %v460_v10 = vld [vmem:[#allocation8 + $0x1a0] sm:$0xff] }
  0x4b   :  { %368 = vmatpush.msrb.mxu2 %v156_v35  ;;  %388 = vmatpush.msrb.mxu3 %v157_v36  ;;  %v524_v11 = vld [vmem:[#allocation8 + $0x3a0] sm:$0xff] }
  0x4c   :  { %329 = vmatpush.msrb.mxu0 %v146_v37  ;;  %349 = vmatpush.msrb.mxu1 %v147_v38  ;;  %v588_v12 = vld [vmem:[#allocation8 + $0x5a0] sm:$0xff] }
  0x4d   :  { %369 = vmatpush.msrb.mxu2 %v148_v39  ;;  %389 = vmatpush.msrb.mxu3 %v149_v40  ;;  %v652_v13 = vld [vmem:[#allocation8 + $0x7a0] sm:$0xff] }
  0x4e   :  { %330 = vmatpush.msrb.mxu0 %v138_v41  ;;  %350 = vmatpush.msrb.mxu1 %v139_v42  ;;  %v456_v14 = vld [vmem:[#allocation8 + $0x180] sm:$0xff] }
  0x4f   :  { %370 = vmatpush.msrb.mxu2 %v140_v43  ;;  %390 = vmatpush.msrb.mxu3 %v141_v44  ;;  %v520_v15 = vld [vmem:[#allocation8 + $0x380] sm:$0xff] }
  0x50   :  { %331 = vmatpush.msrb.mxu0 %v130_v45  ;;  %351 = vmatpush.msrb.mxu1 %v131_v46  ;;  %v648_v16 = vld [vmem:[#allocation8 + $0x780] sm:$0xff] }
  0x51   :  { %371 = vmatpush.msrb.mxu2 %v132_v47  ;;  %391 = vmatpush.msrb.mxu3 %v133_v48  ;;  %v452_v17 = vld [vmem:[#allocation8 + $0x160] sm:$0xff] }
  0x52   :  { %332 = vmatpush.msrb.mxu0 %v122_v49  ;;  %352 = vmatpush.msrb.mxu1 %v123_v50  ;;  %v516_v18 = vld [vmem:[#allocation8 + $0x360] sm:$0xff] }
  0x53   :  { %372 = vmatpush.msrb.mxu2 %v124_v51  ;;  %392 = vmatpush.msrb.mxu3 %v125_v52  ;;  %v580_v19 = vld [vmem:[#allocation8 + $0x560] sm:$0xff] }
  0x54   :  { %333 = vmatpush.msrb.mxu0 %v114_v53  ;;  %353 = vmatpush.msrb.mxu1 %v115_v54  ;;  %v644_v20 = vld [vmem:[#allocation8 + $0x760] sm:$0xff] }
  0x55   :  { %373 = vmatpush.msrb.mxu2 %v116_v55  ;;  %393 = vmatpush.msrb.mxu3 %v117_v56  ;;  %v448_v21 = vld [vmem:[#allocation8 + $0x140] sm:$0xff] }
  0x56   :  { %334 = vmatpush.msrb.mxu0 %v106_v57  ;;  %354 = vmatpush.msrb.mxu1 %v107_v58  ;;  %v512_v22 = vld [vmem:[#allocation8 + $0x340] sm:$0xff] }
  0x57   :  { %374 = vmatpush.msrb.mxu2 %v108_v59  ;;  %394 = vmatpush.msrb.mxu3 %v109_v60  ;;  %v576_v23 = vld [vmem:[#allocation8 + $0x540] sm:$0xff] }
  0x58   :  { %335 = vmatpush.msrb.mxu0 %v98_v61  ;;  %355 = vmatpush.msrb.mxu1 %v99_v62  ;;  %v640_v24 = vld [vmem:[#allocation8 + $0x740] sm:$0xff] }
  0x59   :  { %375 = vmatpush.msrb.mxu2 %v100_v63  ;;  %395 = vmatpush.msrb.mxu3 %v101_v1  ;;  %v444_v25 = vld [vmem:[#allocation8 + $0x120] sm:$0xff] }
  0x5a   :  { %336 = vmatmul.f32.vlgmr.msrb.gmra.mxu0 %v1810_v0  ;;  %356 = vmatmul.f32.vlgmr.msrb.gmra.mxu1 %v1810_v0  ;;  %v508_v26 = vld [vmem:[#allocation8 + $0x320] sm:$0xff] }
  0x5b   :  { %376 = vmatmul.f32.vlgmr.msrb.gmra.mxu2 %v1810_v0  ;;  %396 = vmatmul.f32.vlgmr.msrb.gmra.mxu3 %v1810_v0  ;;  %v584_v0 = vld [vmem:[#allocation8 + $0x580] sm:$0xff] }
  0x5c   :  { %930 = vmatpush.msra.mxu0 %v468_v2  ;;  %950 = vmatpush.msra.mxu1 %v532_v3  ;;  %v572_v27 = vld [vmem:[#allocation8 + $0x520] sm:$0xff] }
  0x5d   :  { %970 = vmatpush.msra.mxu2 %v596_v4  ;;  %990 = vmatpush.msra.mxu3 %v660_v5  ;;  %v636_v28 = vld [vmem:[#allocation8 + $0x720] sm:$0xff] }
  0x5e   :  { %931 = vmatpush.msra.mxu0 %v464_v6  ;;  %951 = vmatpush.msra.mxu1 %v528_v7  ;;  %v440_v29 = vld [vmem:[#allocation8 + $0x100] sm:$0xff] }
  0x5f   :  { %971 = vmatpush.msra.mxu2 %v592_v8  ;;  %991 = vmatpush.msra.mxu3 %v656_v9  ;;  %v504_v30 = vld [vmem:[#allocation8 + $0x300] sm:$0xff] }
  0x60   :  { %932 = vmatpush.msra.mxu0 %v460_v10  ;;  %952 = vmatpush.msra.mxu1 %v524_v11  ;;  %v568_v31 = vld [vmem:[#allocation8 + $0x500] sm:$0xff] }
  0x61   :  { %972 = vmatpush.msra.mxu2 %v588_v12  ;;  %992 = vmatpush.msra.mxu3 %v652_v13  ;;  %v632_v32 = vld [vmem:[#allocation8 + $0x700] sm:$0xff] }
  0x62   :  { %933 = vmatpush.msra.mxu0 %v456_v14  ;;  %953 = vmatpush.msra.mxu1 %v520_v15  ;;  %v436_v33 = vld [vmem:[#allocation8 + $0xe0] sm:$0xff] }
  0x63   :  { %973 = vmatpush.msra.mxu2 %v584_v0  ;;  %993 = vmatpush.msra.mxu3 %v648_v16  ;;  %v500_v34 = vld [vmem:[#allocation8 + $0x2e0] sm:$0xff] }
  0x64   :  { %934 = vmatpush.msra.mxu0 %v452_v17  ;;  %954 = vmatpush.msra.mxu1 %v516_v18  ;;  %v564_v35 = vld [vmem:[#allocation8 + $0x4e0] sm:$0xff] }
  0x65   :  { %974 = vmatpush.msra.mxu2 %v580_v19  ;;  %994 = vmatpush.msra.mxu3 %v644_v20  ;;  %v628_v36 = vld [vmem:[#allocation8 + $0x6e0] sm:$0xff] }
  0x66   :  { %935 = vmatpush.msra.mxu0 %v448_v21  ;;  %955 = vmatpush.msra.mxu1 %v512_v22  ;;  %v432_v37 = vld [vmem:[#allocation8 + $0xc0] sm:$0xff] }
  0x67   :  { %975 = vmatpush.msra.mxu2 %v576_v23  ;;  %995 = vmatpush.msra.mxu3 %v640_v24  ;;  %v496_v38 = vld [vmem:[#allocation8 + $0x2c0] sm:$0xff] }
  0x68   :  { %936 = vmatpush.msra.mxu0 %v444_v25  ;;  %956 = vmatpush.msra.mxu1 %v508_v26  ;;  %v560_v39 = vld [vmem:[#allocation8 + $0x4c0] sm:$0xff] }
  0x69   :  { %976 = vmatpush.msra.mxu2 %v572_v27  ;;  %996 = vmatpush.msra.mxu3 %v636_v28  ;;  %v624_v40 = vld [vmem:[#allocation8 + $0x6c0] sm:$0xff] }
  0x6a   :  { %937 = vmatpush.msra.mxu0 %v440_v29  ;;  %957 = vmatpush.msra.mxu1 %v504_v30  ;;  %v428_v41 = vld [vmem:[#allocation8 + $0xa0] sm:$0xff] }
  0x6b   :  { %977 = vmatpush.msra.mxu2 %v568_v31  ;;  %997 = vmatpush.msra.mxu3 %v632_v32  ;;  %v492_v42 = vld [vmem:[#allocation8 + $0x2a0] sm:$0xff] }
  0x6c   :  { %938 = vmatpush.msra.mxu0 %v436_v33  ;;  %958 = vmatpush.msra.mxu1 %v500_v34  ;;  %v556_v43 = vld [vmem:[#allocation8 + $0x4a0] sm:$0xff] }
  0x6d   :  { %978 = vmatpush.msra.mxu2 %v564_v35  ;;  %998 = vmatpush.msra.mxu3 %v628_v36  ;;  %v620_v44 = vld [vmem:[#allocation8 + $0x6a0] sm:$0xff] }
  0x6e   :  { %939 = vmatpush.msra.mxu0 %v432_v37  ;;  %959 = vmatpush.msra.mxu1 %v496_v38  ;;  %v424_v45 = vld [vmem:[#allocation8 + $0x80] sm:$0xff] }
  0x6f   :  { %v488_v46 = vld [vmem:[#allocation8 + $0x280] sm:$0xff]  ;;  %979 = vmatpush.msra.mxu2 %v560_v39  ;;  %999 = vmatpush.msra.mxu3 %v624_v40 }
  0x70   :  { %940 = vmatpush.msra.mxu0 %v428_v41  ;;  %960 = vmatpush.msra.mxu1 %v492_v42  ;;  %v552_v47 = vld [vmem:[#allocation8 + $0x480] sm:$0xff] }
  0x71   :  { %v616_v48 = vld [vmem:[#allocation8 + $0x680] sm:$0xff]  ;;  %980 = vmatpush.msra.mxu2 %v556_v43  ;;  %1000 = vmatpush.msra.mxu3 %v620_v44 }
  0x72   :  { %v420_v49 = vld [vmem:[#allocation8 + $0x60] sm:$0xff]  ;;  %941 = vmatpush.msra.mxu0 %v424_v45  ;;  %961 = vmatpush.msra.mxu1 %v488_v46 }
  0x73   :  { %v484_v50 = vld [vmem:[#allocation8 + $0x260] sm:$0xff]  ;;  %981 = vmatpush.msra.mxu2 %v552_v47  ;;  %1001 = vmatpush.msra.mxu3 %v616_v48 }
  0x74   :  { %v548_v51 = vld [vmem:[#allocation8 + $0x460] sm:$0xff]  ;;  %942 = vmatpush.msra.mxu0 %v420_v49  ;;  %962 = vmatpush.msra.mxu1 %v484_v50 }
  0x75   :  { %v612_v52 = vld [vmem:[#allocation8 + $0x660] sm:$0xff]  ;;  %982 = vmatpush.msra.mxu2 %v548_v51 }
  0x76   :  { %v416_v53 = vld [vmem:[#allocation8 + $0x40] sm:$0xff]  ;;  %1002 = vmatpush.msra.mxu3 %v612_v52 }
  0x77   :  { %v480_v54 = vld [vmem:[#allocation8 + $0x240] sm:$0xff]  ;;  %943 = vmatpush.msra.mxu0 %v416_v53 }
  0x78   :  { %v544_v55 = vld [vmem:[#allocation8 + $0x440] sm:$0xff]  ;;  %963 = vmatpush.msra.mxu1 %v480_v54 }
  0x79   :  { %v608_v56 = vld [vmem:[#allocation8 + $0x640] sm:$0xff]  ;;  %983 = vmatpush.msra.mxu2 %v544_v55 }
  0x7a   :  { %v412_v57 = vld [vmem:[#allocation8 + $0x20] sm:$0xff]  ;;  %1003 = vmatpush.msra.mxu3 %v608_v56 }
  0x7b   :  { %v476_v58 = vld [vmem:[#allocation8 + $0x220] sm:$0xff]  ;;  %944 = vmatpush.msra.mxu0 %v412_v57 }
  0x7c   :  { %v540_v59 = vld [vmem:[#allocation8 + $0x420] sm:$0xff]  ;;  %964 = vmatpush.msra.mxu1 %v476_v58 }
  0x7d   :  { %v604_v60 = vld [vmem:[#allocation8 + $0x620] sm:$0xff]  ;;  %984 = vmatpush.msra.mxu2 %v540_v59 }
  0x7e   :  { %v408_v61 = vld [vmem:[#allocation8] sm:$0xff]  ;;  %1004 = vmatpush.msra.mxu3 %v604_v60 }
  0x7f   :  { %v472_v62 = vld [vmem:[#allocation8 + $0x200] sm:$0xff]  ;;  %945 = vmatpush.msra.mxu0 %v408_v61 }
  0x80   :  { %v724_v63 = vld [vmem:[#allocation8 + $0x9e0] sm:$0xff]  ;;  %965 = vmatpush.msra.mxu1 %v472_v62 }
  0x81   :  { %v788_v1 = vld [vmem:[#allocation8 + $0xbe0] sm:$0xff]  ;;  %1010 = vmatpush.msrb.mxu0 %v724_v63 }
  0x82   :  { %v536_v2 = vld [vmem:[#allocation8 + $0x400] sm:$0xff]  ;;  %1030 = vmatpush.msrb.mxu1 %v788_v1 }
  0x83   :  { %v600_v3 = vld [vmem:[#allocation8 + $0x600] sm:$0xff]  ;;  %985 = vmatpush.msra.mxu2 %v536_v2  ;;  %v1820_v2 = vld [vmem:[#allocation7] sm:$0xff] }
  0x84   :  { %v720_v4 = vld [vmem:[#allocation8 + $0x9c0] sm:$0xff]  ;;  %1005 = vmatpush.msra.mxu3 %v600_v3  ;;  %v224_v3 = vperm.slane %v1820_v2, 0 }
  0x85   :  { %v784_v5 = vld [vmem:[#allocation8 + $0xbc0] sm:$0xff]  ;;  %1011 = vmatpush.msrb.mxu0 %v720_v4  ;;  %v225_v4 = vperm.slane %v1820_v2, 1 }
  0x86   :  { %v852_v6 = vld [vmem:[#allocation8 + $0xde0] sm:$0xff]  ;;  %1031 = vmatpush.msrb.mxu1 %v784_v5 }
  0x87   :  { %v916_v7 = vld [vmem:[#allocation8 + $0xfe0] sm:$0xff]  ;;  %1050 = vmatpush.msrb.mxu2 %v852_v6 }
  0x88   :  { %v716_v8 = vld [vmem:[#allocation8 + $0x9a0] sm:$0xff]  ;;  %1070 = vmatpush.msrb.mxu3 %v916_v7 }
  0x89   :  { %v780_v9 = vld [vmem:[#allocation8 + $0xba0] sm:$0xff]  ;;  %1012 = vmatpush.msrb.mxu0 %v716_v8 }
  0x8a   :  { %v848_v10 = vld [vmem:[#allocation8 + $0xdc0] sm:$0xff]  ;;  %1032 = vmatpush.msrb.mxu1 %v780_v9 }
  0x8b   :  { %v912_v11 = vld [vmem:[#allocation8 + $0xfc0] sm:$0xff]  ;;  %1051 = vmatpush.msrb.mxu2 %v848_v10 }
  0x8c   :  { %v712_v12 = vld [vmem:[#allocation8 + $0x980] sm:$0xff]  ;;  %1071 = vmatpush.msrb.mxu3 %v912_v11  ;;  %v469_v11 = vld [vmem:[#allocation8 + $0x1e8] sm:$0xff] }
  0x8d   :  { %v776_v13 = vld [vmem:[#allocation8 + $0xb80] sm:$0xff]  ;;  %1013 = vmatpush.msrb.mxu0 %v712_v12  ;;  %v533_v12 = vld [vmem:[#allocation8 + $0x3e8] sm:$0xff] }
  0x8e   :  { %v844_v14 = vld [vmem:[#allocation8 + $0xda0] sm:$0xff]  ;;  %1033 = vmatpush.msrb.mxu1 %v776_v13  ;;  %v226_v13 = vperm.slane %v1820_v2, 2 }
  0x8f   :  { %v908_v15 = vld [vmem:[#allocation8 + $0xfa0] sm:$0xff]  ;;  %1052 = vmatpush.msrb.mxu2 %v844_v14  ;;  %v227_v14 = vperm.slane %v1820_v2, 3 }
  0x90   :  { %v708_v0 = vld [vmem:[#allocation8 + $0x960] sm:$0xff]  ;;  %1072 = vmatpush.msrb.mxu3 %v908_v15  ;;  %v465_v15 = vld [vmem:[#allocation8 + $0x1c8] sm:$0xff] }
  0x91   :  { %v772_v16 = vld [vmem:[#allocation8 + $0xb60] sm:$0xff]  ;;  %1014 = vmatpush.msrb.mxu0 %v708_v0  ;;  %v529_v0 = vld [vmem:[#allocation8 + $0x3c8] sm:$0xff] }
  0x92   :  { %v840_v17 = vld [vmem:[#allocation8 + $0xd80] sm:$0xff]  ;;  %1034 = vmatpush.msrb.mxu1 %v772_v16 }
  0x93   :  { %v904_v18 = vld [vmem:[#allocation8 + $0xf80] sm:$0xff]  ;;  %1053 = vmatpush.msrb.mxu2 %v840_v17 }
  0x94   :  { %v704_v19 = vld [vmem:[#allocation8 + $0x940] sm:$0xff]  ;;  %1073 = vmatpush.msrb.mxu3 %v904_v18  ;;  %v461_v18 = vld [vmem:[#allocation8 + $0x1a8] sm:$0xff] }
  0x95   :  { %v768_v20 = vld [vmem:[#allocation8 + $0xb40] sm:$0xff]  ;;  %1015 = vmatpush.msrb.mxu0 %v704_v19  ;;  %v525_v19 = vld [vmem:[#allocation8 + $0x3a8] sm:$0xff] }
  0x96   :  { %v836_v21 = vld [vmem:[#allocation8 + $0xd60] sm:$0xff]  ;;  %1035 = vmatpush.msrb.mxu1 %v768_v20 }
  0x97   :  { %v900_v22 = vld [vmem:[#allocation8 + $0xf60] sm:$0xff]  ;;  %1054 = vmatpush.msrb.mxu2 %v836_v21 }
  0x98   :  { %v700_v23 = vld [vmem:[#allocation8 + $0x920] sm:$0xff]  ;;  %1074 = vmatpush.msrb.mxu3 %v900_v22 }
  0x99   :  { %v764_v24 = vld [vmem:[#allocation8 + $0xb20] sm:$0xff]  ;;  %1016 = vmatpush.msrb.mxu0 %v700_v23 }
  0x9a   :  { %v832_v25 = vld [vmem:[#allocation8 + $0xd40] sm:$0xff]  ;;  %1036 = vmatpush.msrb.mxu1 %v764_v24  ;;  %v457_v24 = vld [vmem:[#allocation8 + $0x188] sm:$0xff] }
  0x9b   :  { %v896_v26 = vld [vmem:[#allocation8 + $0xf40] sm:$0xff]  ;;  %1055 = vmatpush.msrb.mxu2 %v832_v25  ;;  %v521_v25 = vld [vmem:[#allocation8 + $0x388] sm:$0xff] }
  0x9c   :  { %v696_v27 = vld [vmem:[#allocation8 + $0x900] sm:$0xff]  ;;  %1075 = vmatpush.msrb.mxu3 %v896_v26  ;;  %v597_v26 = vld [vmem:[#allocation8 + $0x5e8] sm:$0xff] }
  0x9d   :  { %v760_v28 = vld [vmem:[#allocation8 + $0xb00] sm:$0xff]  ;;  %1017 = vmatpush.msrb.mxu0 %v696_v27  ;;  %v661_v27 = vld [vmem:[#allocation8 + $0x7e8] sm:$0xff] }
  0x9e   :  { %v828_v29 = vld [vmem:[#allocation8 + $0xd20] sm:$0xff]  ;;  %1037 = vmatpush.msrb.mxu1 %v760_v28  ;;  %v453_v28 = vld [vmem:[#allocation8 + $0x168] sm:$0xff] }
  0x9f   :  { %v892_v30 = vld [vmem:[#allocation8 + $0xf20] sm:$0xff]  ;;  %1056 = vmatpush.msrb.mxu2 %v828_v29  ;;  %v517_v29 = vld [vmem:[#allocation8 + $0x368] sm:$0xff] }
  0xa0   :  { %v692_v31 = vld [vmem:[#allocation8 + $0x8e0] sm:$0xff]  ;;  %1076 = vmatpush.msrb.mxu3 %v892_v30  ;;  %v593_v30 = vld [vmem:[#allocation8 + $0x5c8] sm:$0xff] }
  0xa1   :  { %v756_v32 = vld [vmem:[#allocation8 + $0xae0] sm:$0xff]  ;;  %1018 = vmatpush.msrb.mxu0 %v692_v31  ;;  %v657_v31 = vld [vmem:[#allocation8 + $0x7c8] sm:$0xff] }
  0xa2   :  { %v824_v33 = vld [vmem:[#allocation8 + $0xd00] sm:$0xff]  ;;  %1038 = vmatpush.msrb.mxu1 %v756_v32  ;;  %v449_v32 = vld [vmem:[#allocation8 + $0x148] sm:$0xff] }
  0xa3   :  { %v888_v34 = vld [vmem:[#allocation8 + $0xf00] sm:$0xff]  ;;  %1057 = vmatpush.msrb.mxu2 %v824_v33  ;;  %v513_v33 = vld [vmem:[#allocation8 + $0x348] sm:$0xff] }
  0xa4   :  { %v688_v35 = vld [vmem:[#allocation8 + $0x8c0] sm:$0xff]  ;;  %1077 = vmatpush.msrb.mxu3 %v888_v34  ;;  %v589_v34 = vld [vmem:[#allocation8 + $0x5a8] sm:$0xff] }
  0xa5   :  { %v752_v36 = vld [vmem:[#allocation8 + $0xac0] sm:$0xff]  ;;  %1019 = vmatpush.msrb.mxu0 %v688_v35  ;;  %v653_v35 = vld [vmem:[#allocation8 + $0x7a8] sm:$0xff] }
  0xa6   :  { %v820_v37 = vld [vmem:[#allocation8 + $0xce0] sm:$0xff]  ;;  %1039 = vmatpush.msrb.mxu1 %v752_v36  ;;  %v445_v36 = vld [vmem:[#allocation8 + $0x128] sm:$0xff] }
  0xa7   :  { %v884_v38 = vld [vmem:[#allocation8 + $0xee0] sm:$0xff]  ;;  %1058 = vmatpush.msrb.mxu2 %v820_v37  ;;  %v509_v37 = vld [vmem:[#allocation8 + $0x328] sm:$0xff] }
  0xa8   :  { %v684_v39 = vld [vmem:[#allocation8 + $0x8a0] sm:$0xff]  ;;  %1078 = vmatpush.msrb.mxu3 %v884_v38  ;;  %v585_v38 = vld [vmem:[#allocation8 + $0x588] sm:$0xff] }
  0xa9   :  { %v748_v40 = vld [vmem:[#allocation8 + $0xaa0] sm:$0xff]  ;;  %1020 = vmatpush.msrb.mxu0 %v684_v39  ;;  %v649_v39 = vld [vmem:[#allocation8 + $0x788] sm:$0xff] }
  0xaa   :  { %v816_v41 = vld [vmem:[#allocation8 + $0xcc0] sm:$0xff]  ;;  %1040 = vmatpush.msrb.mxu1 %v748_v40  ;;  %v441_v40 = vld [vmem:[#allocation8 + $0x108] sm:$0xff] }
  0xab   :  { %v880_v42 = vld [vmem:[#allocation8 + $0xec0] sm:$0xff]  ;;  %1059 = vmatpush.msrb.mxu2 %v816_v41  ;;  %v505_v41 = vld [vmem:[#allocation8 + $0x308] sm:$0xff] }
  0xac   :  { %v680_v43 = vld [vmem:[#allocation8 + $0x880] sm:$0xff]  ;;  %1079 = vmatpush.msrb.mxu3 %v880_v42  ;;  %v581_v42 = vld [vmem:[#allocation8 + $0x568] sm:$0xff] }
  0xad   :  { %v744_v44 = vld [vmem:[#allocation8 + $0xa80] sm:$0xff]  ;;  %1021 = vmatpush.msrb.mxu0 %v680_v43  ;;  %v645_v43 = vld [vmem:[#allocation8 + $0x768] sm:$0xff] }
  0xae   :  { %v676_v45 = vld [vmem:[#allocation8 + $0x860] sm:$0xff]  ;;  %1041 = vmatpush.msrb.mxu1 %v744_v44  ;;  %v437_v44 = vld [vmem:[#allocation8 + $0xe8] sm:$0xff] }
  0xaf   :  { %v740_v46 = vld [vmem:[#allocation8 + $0xa60] sm:$0xff]  ;;  %1022 = vmatpush.msrb.mxu0 %v676_v45  ;;  %v501_v45 = vld [vmem:[#allocation8 + $0x2e8] sm:$0xff] }
  0xb0   :  { %1042 = vmatpush.msrb.mxu1 %v740_v46  ;;  %v672_v47 = vld [vmem:[#allocation8 + $0x840] sm:$0xff]  ;;  %v577_v46 = vld [vmem:[#allocation8 + $0x548] sm:$0xff] }
  0xb1   :  { %v736_v48 = vld [vmem:[#allocation8 + $0xa40] sm:$0xff]  ;;  %1023 = vmatpush.msrb.mxu0 %v672_v47  ;;  %v641_v47 = vld [vmem:[#allocation8 + $0x748] sm:$0xff] }
  0xb2   :  { %v812_v49 = vld [vmem:[#allocation8 + $0xca0] sm:$0xff]  ;;  %1043 = vmatpush.msrb.mxu1 %v736_v48  ;;  %v433_v48 = vld [vmem:[#allocation8 + $0xc8] sm:$0xff] }
  0xb3   :  { %v876_v50 = vld [vmem:[#allocation8 + $0xea0] sm:$0xff]  ;;  %1060 = vmatpush.msrb.mxu2 %v812_v49  ;;  %v497_v49 = vld [vmem:[#allocation8 + $0x2c8] sm:$0xff] }
  0xb4   :  { %v668_v51 = vld [vmem:[#allocation8 + $0x820] sm:$0xff]  ;;  %1080 = vmatpush.msrb.mxu3 %v876_v50  ;;  %v573_v50 = vld [vmem:[#allocation8 + $0x528] sm:$0xff] }
  0xb5   :  { %v732_v52 = vld [vmem:[#allocation8 + $0xa20] sm:$0xff]  ;;  %1024 = vmatpush.msrb.mxu0 %v668_v51  ;;  %v257_v5 = vpop.f32.mrf.mxu0  ;;  %v277_v6 = vpop.f32.mrf.mxu1  ;;  %v637_v51 = vld [vmem:[#allocation8 + $0x728] sm:$0xff] }
  0xb6   :  { %v808_v53 = vld [vmem:[#allocation8 + $0xc80] sm:$0xff]  ;;  %1044 = vmatpush.msrb.mxu1 %v732_v52  ;;  %v258_v7 = vadd.f32 %v257_v5, %v224_v3  ;;  %v278_v8 = vadd.f32 %v277_v6, %v225_v4  ;;  %v429_v52 = vld [vmem:[#allocation8 + $0xa8] sm:$0xff]  ;;  %v228_v4 = vperm.slane %v1820_v2, 4  ;;  %v229_v5 = vperm.slane %v1820_v2, 5 }
  0xb7   :  { %v872_v54 = vld [vmem:[#allocation8 + $0xe80] sm:$0xff]  ;;  %1061 = vmatpush.msrb.mxu2 %v808_v53  ;;  %v493_v53 = vld [vmem:[#allocation8 + $0x2a8] sm:$0xff] }
  0xb8   :  { %v664_v55 = vld [vmem:[#allocation8 + $0x800] sm:$0xff]  ;;  %1081 = vmatpush.msrb.mxu3 %v872_v54  ;;  %v1824_v9 = vmax.f32 %v258_v7, 0.0  ;;  %v1826_v10 = vmax.f32 %v278_v8, 0.0  ;;  %v569_v54 = vld [vmem:[#allocation8 + $0x508] sm:$0xff] }
  0xb9   :  { %v728_v56 = vld [vmem:[#allocation8 + $0xa00] sm:$0xff]  ;;  %1025 = vmatpush.msrb.mxu0 %v664_v55  ;;  %v633_v55 = vld [vmem:[#allocation8 + $0x708] sm:$0xff] }
  0xba   :  { %v804_v57 = vld [vmem:[#allocation8 + $0xc60] sm:$0xff]  ;;  %1045 = vmatpush.msrb.mxu1 %v728_v56  ;;  %946 = vmatmul.f32.vlgmr.msra.gmra.mxu0 %v1824_v9  ;;  %v425_v56 = vld [vmem:[#allocation8 + $0x88] sm:$0xff] }
  0xbb   :  { %v868_v58 = vld [vmem:[#allocation8 + $0xe60] sm:$0xff]  ;;  %1062 = vmatpush.msrb.mxu2 %v804_v57  ;;  %966 = vmatmul.f32.vlgmr.msra.gmra.mxu1 %v1826_v10  ;;  %v489_v57 = vld [vmem:[#allocation8 + $0x288] sm:$0xff] }
  0xbc   :  { %1082 = vmatpush.msrb.mxu3 %v868_v58  ;;  %v800_v59 = vld [vmem:[#allocation8 + $0xc40] sm:$0xff]  ;;  %1090 = vmatpush.msra.mxu0 %v469_v11  ;;  %v297_v16 = vpop.f32.mrf.mxu2  ;;  %v317_v17 = vpop.f32.mrf.mxu3  ;;  %v565_v58 = vld [vmem:[#allocation8 + $0x4e8] sm:$0xff] }
  0xbd   :  { %v864_v60 = vld [vmem:[#allocation8 + $0xe40] sm:$0xff]  ;;  %1063 = vmatpush.msrb.mxu2 %v800_v59  ;;  %1110 = vmatpush.msra.mxu1 %v533_v12  ;;  %v298_v20 = vadd.f32 %v297_v16, %v226_v13  ;;  %v318_v21 = vadd.f32 %v317_v17, %v227_v14  ;;  %v629_v59 = vld [vmem:[#allocation8 + $0x6e8] sm:$0xff] }
  0xbe   :  { %v796_v61 = vld [vmem:[#allocation8 + $0xc20] sm:$0xff]  ;;  %1083 = vmatpush.msrb.mxu3 %v864_v60  ;;  %1091 = vmatpush.msra.mxu0 %v465_v15  ;;  %v421_v60 = vld [vmem:[#allocation8 + $0x68] sm:$0xff] }
  0xbf   :  { %v860_v62 = vld [vmem:[#allocation8 + $0xe20] sm:$0xff]  ;;  %1064 = vmatpush.msrb.mxu2 %v796_v61  ;;  %1111 = vmatpush.msra.mxu1 %v529_v0  ;;  %v1832_v22 = vmax.f32 %v298_v20, 0.0  ;;  %v1834_v23 = vmax.f32 %v318_v21, 0.0  ;;  %v485_v61 = vld [vmem:[#allocation8 + $0x268] sm:$0xff] }
  0xc0   :  { %v792_v63 = vld [vmem:[#allocation8 + $0xc00] sm:$0xff]  ;;  %1084 = vmatpush.msrb.mxu3 %v860_v62  ;;  %1092 = vmatpush.msra.mxu0 %v461_v18  ;;  %v561_v62 = vld [vmem:[#allocation8 + $0x4c8] sm:$0xff] }
  0xc1   :  { %v856_v1 = vld [vmem:[#allocation8 + $0xe00] sm:$0xff]  ;;  %1065 = vmatpush.msrb.mxu2 %v792_v63  ;;  %1112 = vmatpush.msra.mxu1 %v525_v19  ;;  %v625_v63 = vld [vmem:[#allocation8 + $0x6c8] sm:$0xff] }
  0xc2   :  { %1085 = vmatpush.msrb.mxu3 %v856_v1  ;;  %986 = vmatmul.f32.vlgmr.msra.gmra.mxu2 %v1832_v22  ;;  %v417_v1 = vld [vmem:[#allocation8 + $0x48] sm:$0xff] }
  0xc3   :  { %1006 = vmatmul.f32.vlgmr.msra.gmra.mxu3 %v1834_v23  ;;  %1093 = vmatpush.msra.mxu0 %v457_v24  ;;  %v481_v3 = vld [vmem:[#allocation8 + $0x248] sm:$0xff] }
  0xc4   :  { %1113 = vmatpush.msra.mxu1 %v521_v25  ;;  %1130 = vmatpush.msra.mxu2 %v597_v26  ;;  %v557_v6 = vld [vmem:[#allocation8 + $0x4a8] sm:$0xff] }
  0xc5   :  { %1150 = vmatpush.msra.mxu3 %v661_v27  ;;  %1094 = vmatpush.msra.mxu0 %v453_v28  ;;  %v621_v7 = vld [vmem:[#allocation8 + $0x6a8] sm:$0xff]  ;;  %v230_v27 = vperm.slane %v1820_v2, 6  ;;  %v231_v28 = vperm.slane %v1820_v2, 7 }
  0xc6   :  { %1114 = vmatpush.msra.mxu1 %v517_v29  ;;  %1131 = vmatpush.msra.mxu2 %v593_v30  ;;  %v413_v8 = vld [vmem:[#allocation8 + $0x28] sm:$0xff] }
  0xc7   :  { %1151 = vmatpush.msra.mxu3 %v657_v31  ;;  %1095 = vmatpush.msra.mxu0 %v449_v32  ;;  %v477_v11 = vld [vmem:[#allocation8 + $0x228] sm:$0xff] }
  0xc8   :  { %1115 = vmatpush.msra.mxu1 %v513_v33  ;;  %1132 = vmatpush.msra.mxu2 %v589_v34  ;;  %v553_v12 = vld [vmem:[#allocation8 + $0x488] sm:$0xff] }
  0xc9   :  { %1152 = vmatpush.msra.mxu3 %v653_v35  ;;  %1096 = vmatpush.msra.mxu0 %v445_v36  ;;  %v617_v13 = vld [vmem:[#allocation8 + $0x688] sm:$0xff] }
  0xca   :  { %1116 = vmatpush.msra.mxu1 %v509_v37  ;;  %1133 = vmatpush.msra.mxu2 %v585_v38  ;;  %v409_v0 = vld [vmem:[#allocation8 + $0x8] sm:$0xff] }
  0xcb   :  { %1153 = vmatpush.msra.mxu3 %v649_v39  ;;  %1097 = vmatpush.msra.mxu0 %v441_v40  ;;  %v473_v16 = vld [vmem:[#allocation8 + $0x208] sm:$0xff] }
  0xcc   :  { %1117 = vmatpush.msra.mxu1 %v505_v41  ;;  %1134 = vmatpush.msra.mxu2 %v581_v42  ;;  %v549_v19 = vld [vmem:[#allocation8 + $0x468] sm:$0xff] }
  0xcd   :  { %1154 = vmatpush.msra.mxu3 %v645_v43  ;;  %1098 = vmatpush.msra.mxu0 %v437_v44  ;;  %v613_v20 = vld [vmem:[#allocation8 + $0x668] sm:$0xff] }
  0xce   :  { %1118 = vmatpush.msra.mxu1 %v501_v45  ;;  %1135 = vmatpush.msra.mxu2 %v577_v46  ;;  %v725_v25 = vld [vmem:[#allocation8 + $0x9e8] sm:$0xff] }
  0xcf   :  { %1155 = vmatpush.msra.mxu3 %v641_v47  ;;  %1099 = vmatpush.msra.mxu0 %v433_v48  ;;  %v789_v26 = vld [vmem:[#allocation8 + $0xbe8] sm:$0xff] }
  0xd0   :  { %1119 = vmatpush.msra.mxu1 %v497_v49  ;;  %1136 = vmatpush.msra.mxu2 %v573_v50  ;;  %v545_v29 = vld [vmem:[#allocation8 + $0x448] sm:$0xff] }
  0xd1   :  { %1156 = vmatpush.msra.mxu3 %v637_v51  ;;  %1100 = vmatpush.msra.mxu0 %v429_v52  ;;  %v609_v30 = vld [vmem:[#allocation8 + $0x648] sm:$0xff] }
  0xd2   :  { %1120 = vmatpush.msra.mxu1 %v493_v53  ;;  %1137 = vmatpush.msra.mxu2 %v569_v54  ;;  %v721_v31 = vld [vmem:[#allocation8 + $0x9c8] sm:$0xff] }
  0xd3   :  { %1157 = vmatpush.msra.mxu3 %v633_v55  ;;  %1101 = vmatpush.msra.mxu0 %v425_v56  ;;  %v785_v32 = vld [vmem:[#allocation8 + $0xbc8] sm:$0xff] }
  0xd4   :  { %1121 = vmatpush.msra.mxu1 %v489_v57  ;;  %1138 = vmatpush.msra.mxu2 %v565_v58  ;;  %v541_v33 = vld [vmem:[#allocation8 + $0x428] sm:$0xff] }
  0xd5   :  { %1158 = vmatpush.msra.mxu3 %v629_v59  ;;  %1102 = vmatpush.msra.mxu0 %v421_v60  ;;  %v605_v34 = vld [vmem:[#allocation8 + $0x628] sm:$0xff] }
  0xd6   :  { %1122 = vmatpush.msra.mxu1 %v485_v61  ;;  %1139 = vmatpush.msra.mxu2 %v561_v62  ;;  %v717_v37 = vld [vmem:[#allocation8 + $0x9a8] sm:$0xff] }
  0xd7   :  { %1159 = vmatpush.msra.mxu3 %v625_v63  ;;  %1103 = vmatpush.msra.mxu0 %v417_v1  ;;  %v337_v14 = vpop.f32.mrf.mxu0  ;;  %v357_v15 = vpop.f32.mrf.mxu1  ;;  %v781_v38 = vld [vmem:[#allocation8 + $0xba8] sm:$0xff] }
  0xd8   :  { %1123 = vmatpush.msra.mxu1 %v481_v3  ;;  %1140 = vmatpush.msra.mxu2 %v557_v6  ;;  %v338_v17 = vadd.f32 %v337_v14, %v228_v4  ;;  %v358_v18 = vadd.f32 %v357_v15, %v229_v5  ;;  %v537_v40 = vld [vmem:[#allocation8 + $0x408] sm:$0xff] }
  0xd9   :  { %1160 = vmatpush.msra.mxu3 %v621_v7  ;;  %1104 = vmatpush.msra.mxu0 %v413_v8  ;;  %v601_v41 = vld [vmem:[#allocation8 + $0x608] sm:$0xff] }
  0xda   :  { %1124 = vmatpush.msra.mxu1 %v477_v11  ;;  %1141 = vmatpush.msra.mxu2 %v553_v12  ;;  %v1840_v21 = vmax.f32 %v338_v17, 0.0  ;;  %v1842_v24 = vmax.f32 %v358_v18, 0.0  ;;  %v713_v44 = vld [vmem:[#allocation8 + $0x988] sm:$0xff] }
  0xdb   :  { %1161 = vmatpush.msra.mxu3 %v617_v13  ;;  %1105 = vmatpush.msra.mxu0 %v409_v0  ;;  %v777_v45 = vld [vmem:[#allocation8 + $0xb88] sm:$0xff] }
  0xdc   :  { %1125 = vmatpush.msra.mxu1 %v473_v16  ;;  %1142 = vmatpush.msra.mxu2 %v549_v19  ;;  %v853_v46 = vld [vmem:[#allocation8 + $0xde8] sm:$0xff] }
  0xdd   :  { %1162 = vmatpush.msra.mxu3 %v613_v20  ;;  %1026 = vmatmul.f32.vlgmr.msrb.gmra.mxu0 %v1840_v21  ;;  %v917_v47 = vld [vmem:[#allocation8 + $0xfe8] sm:$0xff] }
  0xde   :  { %1046 = vmatmul.f32.vlgmr.msrb.gmra.mxu1 %v1842_v24  ;;  %1170 = vmatpush.msrb.mxu0 %v725_v25  ;;  %v377_v35 = vpop.f32.mrf.mxu2  ;;  %v397_v36 = vpop.f32.mrf.mxu3  ;;  %v709_v48 = vld [vmem:[#allocation8 + $0x968] sm:$0xff] }
  0xdf   :  { %1190 = vmatpush.msrb.mxu1 %v789_v26  ;;  %1143 = vmatpush.msra.mxu2 %v545_v29  ;;  %v378_v39 = vadd.f32 %v377_v35, %v230_v27  ;;  %v398_v2 = vadd.f32 %v397_v36, %v231_v28  ;;  %v773_v49 = vld [vmem:[#allocation8 + $0xb68] sm:$0xff] }
  0xe0   :  { %1163 = vmatpush.msra.mxu3 %v609_v30  ;;  %1171 = vmatpush.msrb.mxu0 %v721_v31  ;;  %v849_v50 = vld [vmem:[#allocation8 + $0xdc8] sm:$0xff] }
  0xe1   :  { %1191 = vmatpush.msrb.mxu1 %v785_v32  ;;  %1144 = vmatpush.msra.mxu2 %v541_v33  ;;  %v1848_v42 = vmax.f32 %v378_v39, 0.0  ;;  %v1850_v43 = vmax.f32 %v398_v2, 0.0  ;;  %v913_v51 = vld [vmem:[#allocation8 + $0xfc8] sm:$0xff]  ;;  %v470_v39 = vld [vmem:[#allocation8 + $0x1f0] sm:$0xff] }
  0xe2   :  { %1164 = vmatpush.msra.mxu3 %v605_v34  ;;  %1172 = vmatpush.msrb.mxu0 %v717_v37  ;;  %v705_v52 = vld [vmem:[#allocation8 + $0x948] sm:$0xff]  ;;  %v534_v2 = vld [vmem:[#allocation8 + $0x3f0] sm:$0xff] }
  0xe3   :  { %1192 = vmatpush.msrb.mxu1 %v781_v38  ;;  %1145 = vmatpush.msra.mxu2 %v537_v40  ;;  %v769_v53 = vld [vmem:[#allocation8 + $0xb48] sm:$0xff] }
  0xe4   :  { %1165 = vmatpush.msra.mxu3 %v601_v41  ;;  %1066 = vmatmul.f32.vlgmr.msrb.gmra.mxu2 %v1848_v42  ;;  %v845_v54 = vld [vmem:[#allocation8 + $0xda8] sm:$0xff] }
  0xe5   :  { %1086 = vmatmul.f32.vlgmr.msrb.gmra.mxu3 %v1850_v43  ;;  %1173 = vmatpush.msrb.mxu0 %v713_v44  ;;  %v909_v55 = vld [vmem:[#allocation8 + $0xfa8] sm:$0xff]  ;;  %v466_v44 = vld [vmem:[#allocation8 + $0x1d0] sm:$0xff] }
  0xe6   :  { %1193 = vmatpush.msrb.mxu1 %v777_v45  ;;  %1210 = vmatpush.msrb.mxu2 %v853_v46  ;;  %v701_v56 = vld [vmem:[#allocation8 + $0x928] sm:$0xff]  ;;  %v530_v45 = vld [vmem:[#allocation8 + $0x3d0] sm:$0xff] }
  0xe7   :  { %1230 = vmatpush.msrb.mxu3 %v917_v47  ;;  %1106 = vmatmul.f32.vlgmr.msra.gmra.mxu0 %v1824_v9  ;;  %v765_v57 = vld [vmem:[#allocation8 + $0xb28] sm:$0xff] }
  0xe8   :  { %1126 = vmatmul.f32.vlgmr.msra.gmra.mxu1 %v1826_v10  ;;  %1174 = vmatpush.msrb.mxu0 %v709_v48  ;;  %v841_v58 = vld [vmem:[#allocation8 + $0xd88] sm:$0xff]  ;;  %v462_v48 = vld [vmem:[#allocation8 + $0x1b0] sm:$0xff] }
  0xe9   :  { %1194 = vmatpush.msrb.mxu1 %v773_v49  ;;  %1211 = vmatpush.msrb.mxu2 %v849_v50  ;;  %v905_v59 = vld [vmem:[#allocation8 + $0xf88] sm:$0xff]  ;;  %v526_v49 = vld [vmem:[#allocation8 + $0x3b0] sm:$0xff] }
  0xea   :  { %1231 = vmatpush.msrb.mxu3 %v913_v51  ;;  %1175 = vmatpush.msrb.mxu0 %v705_v52  ;;  %v697_v60 = vld [vmem:[#allocation8 + $0x908] sm:$0xff]  ;;  %v458_v52 = vld [vmem:[#allocation8 + $0x190] sm:$0xff] }
  0xeb   :  { %1195 = vmatpush.msrb.mxu1 %v769_v53  ;;  %1212 = vmatpush.msrb.mxu2 %v845_v54  ;;  %v761_v61 = vld [vmem:[#allocation8 + $0xb08] sm:$0xff]  ;;  %v522_v53 = vld [vmem:[#allocation8 + $0x390] sm:$0xff] }
  0xec   :  { %1232 = vmatpush.msrb.mxu3 %v909_v55  ;;  %1176 = vmatpush.msrb.mxu0 %v701_v56  ;;  %v837_v62 = vld [vmem:[#allocation8 + $0xd68] sm:$0xff]  ;;  %v598_v54 = vld [vmem:[#allocation8 + $0x5f0] sm:$0xff] }
  0xed   :  { %1196 = vmatpush.msrb.mxu1 %v765_v57  ;;  %1213 = vmatpush.msrb.mxu2 %v841_v58  ;;  %v901_v63 = vld [vmem:[#allocation8 + $0xf68] sm:$0xff]  ;;  %v662_v55 = vld [vmem:[#allocation8 + $0x7f0] sm:$0xff] }
  0xee   :  { %1233 = vmatpush.msrb.mxu3 %v905_v59  ;;  %1146 = vmatmul.f32.vlgmr.msra.gmra.mxu2 %v1832_v22  ;;  %v693_v1 = vld [vmem:[#allocation8 + $0x8e8] sm:$0xff]  ;;  %v454_v56 = vld [vmem:[#allocation8 + $0x170] sm:$0xff] }
  0xef   :  { %1166 = vmatmul.f32.vlgmr.msra.gmra.mxu3 %v1834_v23  ;;  %v757_v3 = vld [vmem:[#allocation8 + $0xae8] sm:$0xff]  ;;  %1177 = vmatpush.msrb.mxu0 %v697_v60  ;;  %v518_v57 = vld [vmem:[#allocation8 + $0x370] sm:$0xff] }
  0xf0   :  { %1197 = vmatpush.msrb.mxu1 %v761_v61  ;;  %v833_v4 = vld [vmem:[#allocation8 + $0xd48] sm:$0xff]  ;;  %1214 = vmatpush.msrb.mxu2 %v837_v62  ;;  %v594_v58 = vld [vmem:[#allocation8 + $0x5d0] sm:$0xff] }
  0xf1   :  { %v897_v5 = vld [vmem:[#allocation8 + $0xf48] sm:$0xff]  ;;  %1234 = vmatpush.msrb.mxu3 %v901_v63  ;;  %1178 = vmatpush.msrb.mxu0 %v693_v1  ;;  %v658_v59 = vld [vmem:[#allocation8 + $0x7d0] sm:$0xff] }
  0xf2   :  { %v689_v6 = vld [vmem:[#allocation8 + $0x8c8] sm:$0xff]  ;;  %1198 = vmatpush.msrb.mxu1 %v757_v3  ;;  %1215 = vmatpush.msrb.mxu2 %v833_v4  ;;  %v450_v60 = vld [vmem:[#allocation8 + $0x150] sm:$0xff] }
  0xf3   :  { %v753_v7 = vld [vmem:[#allocation8 + $0xac8] sm:$0xff]  ;;  %1235 = vmatpush.msrb.mxu3 %v897_v5  ;;  %1179 = vmatpush.msrb.mxu0 %v689_v6  ;;  %v514_v61 = vld [vmem:[#allocation8 + $0x350] sm:$0xff] }
  0xf4   :  { %v829_v8 = vld [vmem:[#allocation8 + $0xd28] sm:$0xff]  ;;  %1199 = vmatpush.msrb.mxu1 %v753_v7  ;;  %v590_v62 = vld [vmem:[#allocation8 + $0x5b0] sm:$0xff] }
  0xf5   :  { %v893_v11 = vld [vmem:[#allocation8 + $0xf28] sm:$0xff]  ;;  %1216 = vmatpush.msrb.mxu2 %v829_v8  ;;  %v654_v63 = vld [vmem:[#allocation8 + $0x7b0] sm:$0xff] }
  0xf6   :  { %v685_v12 = vld [vmem:[#allocation8 + $0x8a8] sm:$0xff]  ;;  %1236 = vmatpush.msrb.mxu3 %v893_v11  ;;  %v446_v1 = vld [vmem:[#allocation8 + $0x130] sm:$0xff] }
  0xf7   :  { %v749_v13 = vld [vmem:[#allocation8 + $0xaa8] sm:$0xff]  ;;  %1180 = vmatpush.msrb.mxu0 %v685_v12  ;;  %v510_v3 = vld [vmem:[#allocation8 + $0x330] sm:$0xff] }
  0xf8   :  { %v825_v14 = vld [vmem:[#allocation8 + $0xd08] sm:$0xff]  ;;  %1200 = vmatpush.msrb.mxu1 %v749_v13  ;;  %v586_v4 = vld [vmem:[#allocation8 + $0x590] sm:$0xff] }
  0xf9   :  { %v889_v15 = vld [vmem:[#allocation8 + $0xf08] sm:$0xff]  ;;  %1217 = vmatpush.msrb.mxu2 %v825_v14  ;;  %v650_v5 = vld [vmem:[#allocation8 + $0x790] sm:$0xff] }
  0xfa   :  { %v681_v0 = vld [vmem:[#allocation8 + $0x888] sm:$0xff]  ;;  %1237 = vmatpush.msrb.mxu3 %v889_v15  ;;  %v442_v6 = vld [vmem:[#allocation8 + $0x110] sm:$0xff] }
  0xfb   :  { %v745_v16 = vld [vmem:[#allocation8 + $0xa88] sm:$0xff]  ;;  %1181 = vmatpush.msrb.mxu0 %v681_v0  ;;  %v506_v7 = vld [vmem:[#allocation8 + $0x310] sm:$0xff] }
  0xfc   :  { %v821_v17 = vld [vmem:[#allocation8 + $0xce8] sm:$0xff]  ;;  %1201 = vmatpush.msrb.mxu1 %v745_v16  ;;  %v582_v8 = vld [vmem:[#allocation8 + $0x570] sm:$0xff] }
  0xfd   :  { %v885_v18 = vld [vmem:[#allocation8 + $0xee8] sm:$0xff]  ;;  %1218 = vmatpush.msrb.mxu2 %v821_v17  ;;  %v646_v11 = vld [vmem:[#allocation8 + $0x770] sm:$0xff] }
  0xfe   :  { %v677_v19 = vld [vmem:[#allocation8 + $0x868] sm:$0xff]  ;;  %1238 = vmatpush.msrb.mxu3 %v885_v18  ;;  %v438_v12 = vld [vmem:[#allocation8 + $0xf0] sm:$0xff] }
  0xff   :  { %v741_v20 = vld [vmem:[#allocation8 + $0xa68] sm:$0xff]  ;;  %1182 = vmatpush.msrb.mxu0 %v677_v19  ;;  %v502_v13 = vld [vmem:[#allocation8 + $0x2f0] sm:$0xff] }
 0x100   :  { %v817_v25 = vld [vmem:[#allocation8 + $0xcc8] sm:$0xff]  ;;  %1202 = vmatpush.msrb.mxu1 %v741_v20  ;;  %v578_v14 = vld [vmem:[#allocation8 + $0x550] sm:$0xff] }
 0x101   :  { %v881_v26 = vld [vmem:[#allocation8 + $0xec8] sm:$0xff]  ;;  %1219 = vmatpush.msrb.mxu2 %v817_v25  ;;  %v642_v15 = vld [vmem:[#allocation8 + $0x750] sm:$0xff] }
 0x102   :  { %v673_v27 = vld [vmem:[#allocation8 + $0x848] sm:$0xff]  ;;  %1239 = vmatpush.msrb.mxu3 %v881_v26  ;;  %v434_v0 = vld [vmem:[#allocation8 + $0xd0] sm:$0xff] }
 0x103   :  { %v737_v28 = vld [vmem:[#allocation8 + $0xa48] sm:$0xff]  ;;  %1183 = vmatpush.msrb.mxu0 %v673_v27  ;;  %v498_v16 = vld [vmem:[#allocation8 + $0x2d0] sm:$0xff] }
 0x104   :  { %v813_v29 = vld [vmem:[#allocation8 + $0xca8] sm:$0xff]  ;;  %1203 = vmatpush.msrb.mxu1 %v737_v28  ;;  %v574_v17 = vld [vmem:[#allocation8 + $0x530] sm:$0xff] }
 0x105   :  { %v877_v30 = vld [vmem:[#allocation8 + $0xea8] sm:$0xff]  ;;  %1220 = vmatpush.msrb.mxu2 %v813_v29  ;;  %v638_v18 = vld [vmem:[#allocation8 + $0x730] sm:$0xff] }
 0x106   :  { %v669_v31 = vld [vmem:[#allocation8 + $0x828] sm:$0xff]  ;;  %1240 = vmatpush.msrb.mxu3 %v877_v30  ;;  %v430_v19 = vld [vmem:[#allocation8 + $0xb0] sm:$0xff] }
 0x107   :  { %v733_v32 = vld [vmem:[#allocation8 + $0xa28] sm:$0xff]  ;;  %1184 = vmatpush.msrb.mxu0 %v669_v31  ;;  %v494_v20 = vld [vmem:[#allocation8 + $0x2b0] sm:$0xff] }
 0x108   :  { %v809_v33 = vld [vmem:[#allocation8 + $0xc88] sm:$0xff]  ;;  %1204 = vmatpush.msrb.mxu1 %v733_v32  ;;  %v570_v25 = vld [vmem:[#allocation8 + $0x510] sm:$0xff] }
 0x109   :  { %v873_v34 = vld [vmem:[#allocation8 + $0xe88] sm:$0xff]  ;;  %1221 = vmatpush.msrb.mxu2 %v809_v33  ;;  %v634_v26 = vld [vmem:[#allocation8 + $0x710] sm:$0xff] }
 0x10a   :  { %v665_v35 = vld [vmem:[#allocation8 + $0x808] sm:$0xff]  ;;  %1241 = vmatpush.msrb.mxu3 %v873_v34  ;;  %v426_v27 = vld [vmem:[#allocation8 + $0x90] sm:$0xff] }
 0x10b   :  { %v729_v36 = vld [vmem:[#allocation8 + $0xa08] sm:$0xff]  ;;  %1185 = vmatpush.msrb.mxu0 %v665_v35  ;;  %v490_v28 = vld [vmem:[#allocation8 + $0x290] sm:$0xff] }
 0x10c   :  { %v805_v37 = vld [vmem:[#allocation8 + $0xc68] sm:$0xff]  ;;  %1205 = vmatpush.msrb.mxu1 %v729_v36  ;;  %1186 = vmatmul.f32.vlgmr.msrb.gmra.mxu0 %v1840_v21  ;;  %v566_v29 = vld [vmem:[#allocation8 + $0x4f0] sm:$0xff] }
 0x10d   :  { %v869_v38 = vld [vmem:[#allocation8 + $0xe68] sm:$0xff]  ;;  %1222 = vmatpush.msrb.mxu2 %v805_v37  ;;  %1206 = vmatmul.f32.vlgmr.msrb.gmra.mxu1 %v1842_v24  ;;  %v630_v30 = vld [vmem:[#allocation8 + $0x6f0] sm:$0xff] }
 0x10e   :  { %1242 = vmatpush.msrb.mxu3 %v869_v38  ;;  %v801_v40 = vld [vmem:[#allocation8 + $0xc48] sm:$0xff]  ;;  %1250 = vmatpush.msra.mxu0 %v470_v39  ;;  %v422_v31 = vld [vmem:[#allocation8 + $0x70] sm:$0xff] }
 0x10f   :  { %v865_v41 = vld [vmem:[#allocation8 + $0xe48] sm:$0xff]  ;;  %1270 = vmatpush.msra.mxu1 %v534_v2  ;;  %1223 = vmatpush.msrb.mxu2 %v801_v40  ;;  %v486_v32 = vld [vmem:[#allocation8 + $0x270] sm:$0xff] }
 0x110   :  { %v797_v46 = vld [vmem:[#allocation8 + $0xc28] sm:$0xff]  ;;  %1243 = vmatpush.msrb.mxu3 %v865_v41  ;;  %1251 = vmatpush.msra.mxu0 %v466_v44  ;;  %v562_v33 = vld [vmem:[#allocation8 + $0x4d0] sm:$0xff] }
 0x111   :  { %v861_v47 = vld [vmem:[#allocation8 + $0xe28] sm:$0xff]  ;;  %1271 = vmatpush.msra.mxu1 %v530_v45  ;;  %1224 = vmatpush.msrb.mxu2 %v797_v46  ;;  %v626_v34 = vld [vmem:[#allocation8 + $0x6d0] sm:$0xff] }
 0x112   :  { %v793_v50 = vld [vmem:[#allocation8 + $0xc08] sm:$0xff]  ;;  %1244 = vmatpush.msrb.mxu3 %v861_v47  ;;  %1252 = vmatpush.msra.mxu0 %v462_v48  ;;  %v418_v35 = vld [vmem:[#allocation8 + $0x50] sm:$0xff] }
 0x113   :  { %v857_v51 = vld [vmem:[#allocation8 + $0xe08] sm:$0xff]  ;;  %1272 = vmatpush.msra.mxu1 %v526_v49  ;;  %1225 = vmatpush.msrb.mxu2 %v793_v50  ;;  %v482_v36 = vld [vmem:[#allocation8 + $0x250] sm:$0xff] }
 0x114   :  { %1245 = vmatpush.msrb.mxu3 %v857_v51  ;;  %1226 = vmatmul.f32.vlgmr.msrb.gmra.mxu2 %v1848_v42  ;;  %v558_v37 = vld [vmem:[#allocation8 + $0x4b0] sm:$0xff] }
 0x115   :  { %1246 = vmatmul.f32.vlgmr.msrb.gmra.mxu3 %v1850_v43  ;;  %1253 = vmatpush.msra.mxu0 %v458_v52  ;;  %v622_v38 = vld [vmem:[#allocation8 + $0x6b0] sm:$0xff] }
 0x116   :  { %1273 = vmatpush.msra.mxu1 %v522_v53  ;;  %1290 = vmatpush.msra.mxu2 %v598_v54  ;;  %v414_v39 = vld [vmem:[#allocation8 + $0x30] sm:$0xff] }
 0x117   :  { %1310 = vmatpush.msra.mxu3 %v662_v55  ;;  %1254 = vmatpush.msra.mxu0 %v454_v56  ;;  %v478_v2 = vld [vmem:[#allocation8 + $0x230] sm:$0xff] }
 0x118   :  { %1274 = vmatpush.msra.mxu1 %v518_v57  ;;  %1291 = vmatpush.msra.mxu2 %v594_v58  ;;  %v554_v40 = vld [vmem:[#allocation8 + $0x490] sm:$0xff] }
 0x119   :  { %1311 = vmatpush.msra.mxu3 %v658_v59  ;;  %1255 = vmatpush.msra.mxu0 %v450_v60  ;;  %v618_v41 = vld [vmem:[#allocation8 + $0x690] sm:$0xff] }
 0x11a   :  { %1275 = vmatpush.msra.mxu1 %v514_v61  ;;  %1292 = vmatpush.msra.mxu2 %v590_v62  ;;  %v410_v44 = vld [vmem:[#allocation8 + $0x10] sm:$0xff] }
 0x11b   :  { %1312 = vmatpush.msra.mxu3 %v654_v63  ;;  %1256 = vmatpush.msra.mxu0 %v446_v1  ;;  %v474_v45 = vld [vmem:[#allocation8 + $0x210] sm:$0xff] }
 0x11c   :  { %1276 = vmatpush.msra.mxu1 %v510_v3  ;;  %1293 = vmatpush.msra.mxu2 %v586_v4  ;;  %v550_v46 = vld [vmem:[#allocation8 + $0x470] sm:$0xff] }
 0x11d   :  { %1313 = vmatpush.msra.mxu3 %v650_v5  ;;  %1257 = vmatpush.msra.mxu0 %v442_v6  ;;  %v614_v47 = vld [vmem:[#allocation8 + $0x670] sm:$0xff] }
 0x11e   :  { %1277 = vmatpush.msra.mxu1 %v506_v7  ;;  %1294 = vmatpush.msra.mxu2 %v582_v8  ;;  %v726_v48 = vld [vmem:[#allocation8 + $0x9f0] sm:$0xff] }
 0x11f   :  { %1314 = vmatpush.msra.mxu3 %v646_v11  ;;  %1258 = vmatpush.msra.mxu0 %v438_v12  ;;  %v790_v49 = vld [vmem:[#allocation8 + $0xbf0] sm:$0xff] }
 0x120   :  { %1278 = vmatpush.msra.mxu1 %v502_v13  ;;  %1295 = vmatpush.msra.mxu2 %v578_v14  ;;  %v546_v50 = vld [vmem:[#allocation8 + $0x450] sm:$0xff] }
 0x121   :  { %1315 = vmatpush.msra.mxu3 %v642_v15  ;;  %1259 = vmatpush.msra.mxu0 %v434_v0  ;;  %v610_v51 = vld [vmem:[#allocation8 + $0x650] sm:$0xff] }
 0x122   :  { %1279 = vmatpush.msra.mxu1 %v498_v16  ;;  %1296 = vmatpush.msra.mxu2 %v574_v17  ;;  %v722_v52 = vld [vmem:[#allocation8 + $0x9d0] sm:$0xff] }
 0x123   :  { %1316 = vmatpush.msra.mxu3 %v638_v18  ;;  %1260 = vmatpush.msra.mxu0 %v430_v19  ;;  %v786_v53 = vld [vmem:[#allocation8 + $0xbd0] sm:$0xff] }
 0x124   :  { %1280 = vmatpush.msra.mxu1 %v494_v20  ;;  %1297 = vmatpush.msra.mxu2 %v570_v25  ;;  %v542_v54 = vld [vmem:[#allocation8 + $0x430] sm:$0xff] }
 0x125   :  { %1317 = vmatpush.msra.mxu3 %v634_v26  ;;  %1261 = vmatpush.msra.mxu0 %v426_v27  ;;  %v606_v55 = vld [vmem:[#allocation8 + $0x630] sm:$0xff] }
 0x126   :  { %1281 = vmatpush.msra.mxu1 %v490_v28  ;;  %1298 = vmatpush.msra.mxu2 %v566_v29  ;;  %v718_v56 = vld [vmem:[#allocation8 + $0x9b0] sm:$0xff] }
 0x127   :  { %1318 = vmatpush.msra.mxu3 %v630_v30  ;;  %1262 = vmatpush.msra.mxu0 %v422_v31  ;;  %v782_v57 = vld [vmem:[#allocation8 + $0xbb0] sm:$0xff] }
 0x128   :  { %1282 = vmatpush.msra.mxu1 %v486_v32  ;;  %1299 = vmatpush.msra.mxu2 %v562_v33  ;;  %v538_v58 = vld [vmem:[#allocation8 + $0x410] sm:$0xff] }
 0x129   :  { %1319 = vmatpush.msra.mxu3 %v626_v34  ;;  %1263 = vmatpush.msra.mxu0 %v418_v35  ;;  %v602_v59 = vld [vmem:[#allocation8 + $0x610] sm:$0xff] }
 0x12a   :  { %1283 = vmatpush.msra.mxu1 %v482_v36  ;;  %1300 = vmatpush.msra.mxu2 %v558_v37  ;;  %v714_v60 = vld [vmem:[#allocation8 + $0x990] sm:$0xff] }
 0x12b   :  { %1320 = vmatpush.msra.mxu3 %v622_v38  ;;  %1264 = vmatpush.msra.mxu0 %v414_v39  ;;  %v778_v61 = vld [vmem:[#allocation8 + $0xb90] sm:$0xff] }
 0x12c   :  { %1284 = vmatpush.msra.mxu1 %v478_v2  ;;  %1301 = vmatpush.msra.mxu2 %v554_v40  ;;  %v854_v62 = vld [vmem:[#allocation8 + $0xdf0] sm:$0xff] }
 0x12d   :  { %1321 = vmatpush.msra.mxu3 %v618_v41  ;;  %1265 = vmatpush.msra.mxu0 %v410_v44  ;;  %v918_v63 = vld [vmem:[#allocation8 + $0xff0] sm:$0xff] }
 0x12e   :  { %1285 = vmatpush.msra.mxu1 %v474_v45  ;;  %1302 = vmatpush.msra.mxu2 %v550_v46  ;;  %v710_v1 = vld [vmem:[#allocation8 + $0x970] sm:$0xff] }
 0x12f   :  { %1322 = vmatpush.msra.mxu3 %v614_v47  ;;  %1266 = vmatmul.f32.vlgmr.msra.gmra.mxu0 %v1824_v9  ;;  %v774_v3 = vld [vmem:[#allocation8 + $0xb70] sm:$0xff] }
 0x130   :  { %1286 = vmatmul.f32.vlgmr.msra.gmra.mxu1 %v1826_v10  ;;  %1330 = vmatpush.msrb.mxu0 %v726_v48  ;;  %v850_v4 = vld [vmem:[#allocation8 + $0xdd0] sm:$0xff] }
 0x131   :  { %1350 = vmatpush.msrb.mxu1 %v790_v49  ;;  %1303 = vmatpush.msra.mxu2 %v546_v50  ;;  %v914_v5 = vld [vmem:[#allocation8 + $0xfd0] sm:$0xff] }
 0x132   :  { %1323 = vmatpush.msra.mxu3 %v610_v51  ;;  %1331 = vmatpush.msrb.mxu0 %v722_v52  ;;  %v706_v6 = vld [vmem:[#allocation8 + $0x950] sm:$0xff] }
 0x133   :  { %1351 = vmatpush.msrb.mxu1 %v786_v53  ;;  %1304 = vmatpush.msra.mxu2 %v542_v54  ;;  %v770_v7 = vld [vmem:[#allocation8 + $0xb50] sm:$0xff] }
 0x134   :  { %1324 = vmatpush.msra.mxu3 %v606_v55  ;;  %1332 = vmatpush.msrb.mxu0 %v718_v56  ;;  %v846_v8 = vld [vmem:[#allocation8 + $0xdb0] sm:$0xff]  ;;  %v471_v56 = vld [vmem:[#allocation8 + $0x1f8] sm:$0xff] }
 0x135   :  { %1352 = vmatpush.msrb.mxu1 %v782_v57  ;;  %1305 = vmatpush.msra.mxu2 %v538_v58  ;;  %v910_v11 = vld [vmem:[#allocation8 + $0xfb0] sm:$0xff]  ;;  %v535_v57 = vld [vmem:[#allocation8 + $0x3f8] sm:$0xff] }
 0x136   :  { %1325 = vmatpush.msra.mxu3 %v602_v59  ;;  %1306 = vmatmul.f32.vlgmr.msra.gmra.mxu2 %v1832_v22  ;;  %v702_v12 = vld [vmem:[#allocation8 + $0x930] sm:$0xff] }
 0x137   :  { %1326 = vmatmul.f32.vlgmr.msra.gmra.mxu3 %v1834_v23  ;;  %1333 = vmatpush.msrb.mxu0 %v714_v60  ;;  %v766_v13 = vld [vmem:[#allocation8 + $0xb30] sm:$0xff]  ;;  %v467_v60 = vld [vmem:[#allocation8 + $0x1d8] sm:$0xff] }
 0x138   :  { %1353 = vmatpush.msrb.mxu1 %v778_v61  ;;  %1370 = vmatpush.msrb.mxu2 %v854_v62  ;;  %v842_v14 = vld [vmem:[#allocation8 + $0xd90] sm:$0xff]  ;;  %v531_v61 = vld [vmem:[#allocation8 + $0x3d8] sm:$0xff] }
 0x139   :  { %1390 = vmatpush.msrb.mxu3 %v918_v63  ;;  %1334 = vmatpush.msrb.mxu0 %v710_v1  ;;  %v906_v15 = vld [vmem:[#allocation8 + $0xf90] sm:$0xff]  ;;  %v463_v1 = vld [vmem:[#allocation8 + $0x1b8] sm:$0xff] }
 0x13a   :  { %1354 = vmatpush.msrb.mxu1 %v774_v3  ;;  %1371 = vmatpush.msrb.mxu2 %v850_v4  ;;  %v698_v0 = vld [vmem:[#allocation8 + $0x910] sm:$0xff]  ;;  %v527_v3 = vld [vmem:[#allocation8 + $0x3b8] sm:$0xff] }
 0x13b   :  { %1391 = vmatpush.msrb.mxu3 %v914_v5  ;;  %1335 = vmatpush.msrb.mxu0 %v706_v6  ;;  %v762_v16 = vld [vmem:[#allocation8 + $0xb10] sm:$0xff]  ;;  %v459_v6 = vld [vmem:[#allocation8 + $0x198] sm:$0xff] }
 0x13c   :  { %1355 = vmatpush.msrb.mxu1 %v770_v7  ;;  %1372 = vmatpush.msrb.mxu2 %v846_v8  ;;  %v838_v17 = vld [vmem:[#allocation8 + $0xd70] sm:$0xff]  ;;  %v523_v7 = vld [vmem:[#allocation8 + $0x398] sm:$0xff] }
 0x13d   :  { %1392 = vmatpush.msrb.mxu3 %v910_v11  ;;  %1336 = vmatpush.msrb.mxu0 %v702_v12  ;;  %v902_v18 = vld [vmem:[#allocation8 + $0xf70] sm:$0xff]  ;;  %v599_v8 = vld [vmem:[#allocation8 + $0x5f8] sm:$0xff] }
 0x13e   :  { %1356 = vmatpush.msrb.mxu1 %v766_v13  ;;  %1373 = vmatpush.msrb.mxu2 %v842_v14  ;;  %v694_v19 = vld [vmem:[#allocation8 + $0x8f0] sm:$0xff]  ;;  %v663_v11 = vld [vmem:[#allocation8 + $0x7f8] sm:$0xff] }
 0x13f   :  { %1393 = vmatpush.msrb.mxu3 %v906_v15  ;;  %v758_v20 = vld [vmem:[#allocation8 + $0xaf0] sm:$0xff]  ;;  %1337 = vmatpush.msrb.mxu0 %v698_v0  ;;  %v455_v12 = vld [vmem:[#allocation8 + $0x178] sm:$0xff]  ;;  %v1870_v0 = vld [vmem:[#allocation10] sm:$0xf] }
 0x140   :  { %1357 = vmatpush.msrb.mxu1 %v762_v16  ;;  %v834_v25 = vld [vmem:[#allocation8 + $0xd50] sm:$0xff]  ;;  %1374 = vmatpush.msrb.mxu2 %v838_v17  ;;  %v519_v13 = vld [vmem:[#allocation8 + $0x378] sm:$0xff] }
 0x141   :  { %v898_v26 = vld [vmem:[#allocation8 + $0xf50] sm:$0xff]  ;;  %1394 = vmatpush.msrb.mxu3 %v902_v18  ;;  %1338 = vmatpush.msrb.mxu0 %v694_v19  ;;  %v595_v14 = vld [vmem:[#allocation8 + $0x5d8] sm:$0xff] }
 0x142   :  { %v690_v27 = vld [vmem:[#allocation8 + $0x8d0] sm:$0xff]  ;;  %1358 = vmatpush.msrb.mxu1 %v758_v20  ;;  %1375 = vmatpush.msrb.mxu2 %v834_v25  ;;  %v659_v15 = vld [vmem:[#allocation8 + $0x7d8] sm:$0xff]  ;;  %v922_v20 = vperm.slane %v1870_v0, 0 }
 0x143   :  { %v754_v28 = vld [vmem:[#allocation8 + $0xad0] sm:$0xff]  ;;  %1395 = vmatpush.msrb.mxu3 %v898_v26  ;;  %1339 = vmatpush.msrb.mxu0 %v690_v27  ;;  %v451_v16 = vld [vmem:[#allocation8 + $0x158] sm:$0xff]  ;;  %v947_v27 = vpop.f32.mrf.mxu0 }
 0x144   :  { %v830_v29 = vld [vmem:[#allocation8 + $0xd30] sm:$0xff]  ;;  %1359 = vmatpush.msrb.mxu1 %v754_v28  ;;  %v515_v17 = vld [vmem:[#allocation8 + $0x358] sm:$0xff] }
 0x145   :  { %v894_v30 = vld [vmem:[#allocation8 + $0xf30] sm:$0xff]  ;;  %1376 = vmatpush.msrb.mxu2 %v830_v29  ;;  %v591_v18 = vld [vmem:[#allocation8 + $0x5b8] sm:$0xff] }
 0x146   :  { %v686_v31 = vld [vmem:[#allocation8 + $0x8b0] sm:$0xff]  ;;  %1396 = vmatpush.msrb.mxu3 %v894_v30  ;;  %v655_v19 = vld [vmem:[#allocation8 + $0x7b8] sm:$0xff] }
 0x147   :  { %v750_v32 = vld [vmem:[#allocation8 + $0xab0] sm:$0xff]  ;;  %1340 = vmatpush.msrb.mxu0 %v686_v31  ;;  %v447_v25 = vld [vmem:[#allocation8 + $0x138] sm:$0xff] }
 0x148   :  { %v826_v33 = vld [vmem:[#allocation8 + $0xd10] sm:$0xff]  ;;  %1360 = vmatpush.msrb.mxu1 %v750_v32  ;;  %v511_v26 = vld [vmem:[#allocation8 + $0x338] sm:$0xff] }
 0x149   :  { %v890_v34 = vld [vmem:[#allocation8 + $0xf10] sm:$0xff]  ;;  %1377 = vmatpush.msrb.mxu2 %v826_v33  ;;  %v587_v28 = vld [vmem:[#allocation8 + $0x598] sm:$0xff] }
 0x14a   :  { %v682_v35 = vld [vmem:[#allocation8 + $0x890] sm:$0xff]  ;;  %1397 = vmatpush.msrb.mxu3 %v890_v34  ;;  %v651_v29 = vld [vmem:[#allocation8 + $0x798] sm:$0xff]  ;;  %v948_v34 = vadd.f32 %v947_v27, %v922_v20 }
 0x14b   :  { %v746_v36 = vld [vmem:[#allocation8 + $0xa90] sm:$0xff]  ;;  %1341 = vmatpush.msrb.mxu0 %v682_v35  ;;  %v443_v30 = vld [vmem:[#allocation8 + $0x118] sm:$0xff] }
 0x14c   :  { %v822_v37 = vld [vmem:[#allocation8 + $0xcf0] sm:$0xff]  ;;  %1361 = vmatpush.msrb.mxu1 %v746_v36  ;;  %v507_v31 = vld [vmem:[#allocation8 + $0x318] sm:$0xff] }
 0x14d   :  { %v886_v38 = vld [vmem:[#allocation8 + $0xef0] sm:$0xff]  ;;  %1378 = vmatpush.msrb.mxu2 %v822_v37  ;;  %v583_v32 = vld [vmem:[#allocation8 + $0x578] sm:$0xff]  ;;  %v967_v37 = vpop.f32.mrf.mxu1 }
 0x14e   :  { %v678_v39 = vld [vmem:[#allocation8 + $0x870] sm:$0xff]  ;;  %1398 = vmatpush.msrb.mxu3 %v886_v38  ;;  %v647_v33 = vld [vmem:[#allocation8 + $0x778] sm:$0xff] }
 0x14f   :  { %v742_v2 = vld [vmem:[#allocation8 + $0xa70] sm:$0xff]  ;;  %1342 = vmatpush.msrb.mxu0 %v678_v39  ;;  %v439_v35 = vld [vmem:[#allocation8 + $0xf8] sm:$0xff] }
 0x150   :  { %v818_v40 = vld [vmem:[#allocation8 + $0xcd0] sm:$0xff]  ;;  %1362 = vmatpush.msrb.mxu1 %v742_v2  ;;  %v503_v36 = vld [vmem:[#allocation8 + $0x2f8] sm:$0xff] }
 0x151   :  { %v882_v41 = vld [vmem:[#allocation8 + $0xed0] sm:$0xff]  ;;  %1379 = vmatpush.msrb.mxu2 %v818_v40  ;;  %v579_v38 = vld [vmem:[#allocation8 + $0x558] sm:$0xff] }
 0x152   :  { %v674_v44 = vld [vmem:[#allocation8 + $0x850] sm:$0xff]  ;;  %1399 = vmatpush.msrb.mxu3 %v882_v41  ;;  %v643_v39 = vld [vmem:[#allocation8 + $0x758] sm:$0xff] }
 0x153   :  { %v738_v45 = vld [vmem:[#allocation8 + $0xa50] sm:$0xff]  ;;  %1343 = vmatpush.msrb.mxu0 %v674_v44  ;;  %v435_v2 = vld [vmem:[#allocation8 + $0xd8] sm:$0xff] }
 0x154   :  { %v814_v46 = vld [vmem:[#allocation8 + $0xcb0] sm:$0xff]  ;;  %1363 = vmatpush.msrb.mxu1 %v738_v45  ;;  %v499_v40 = vld [vmem:[#allocation8 + $0x2d8] sm:$0xff]  ;;  %v968_v45 = vadd.f32 %v967_v37, %v948_v34 }
 0x155   :  { %v878_v47 = vld [vmem:[#allocation8 + $0xeb0] sm:$0xff]  ;;  %1380 = vmatpush.msrb.mxu2 %v814_v46  ;;  %v575_v41 = vld [vmem:[#allocation8 + $0x538] sm:$0xff] }
 0x156   :  { %v670_v48 = vld [vmem:[#allocation8 + $0x830] sm:$0xff]  ;;  %1400 = vmatpush.msrb.mxu3 %v878_v47  ;;  %v639_v44 = vld [vmem:[#allocation8 + $0x738] sm:$0xff] }
 0x157   :  { %v734_v49 = vld [vmem:[#allocation8 + $0xa30] sm:$0xff]  ;;  %1344 = vmatpush.msrb.mxu0 %v670_v48  ;;  %v431_v46 = vld [vmem:[#allocation8 + $0xb8] sm:$0xff]  ;;  %v987_v48 = vpop.f32.mrf.mxu2 }
 0x158   :  { %v810_v50 = vld [vmem:[#allocation8 + $0xc90] sm:$0xff]  ;;  %1364 = vmatpush.msrb.mxu1 %v734_v49  ;;  %v495_v47 = vld [vmem:[#allocation8 + $0x2b8] sm:$0xff] }
 0x159   :  { %v874_v51 = vld [vmem:[#allocation8 + $0xe90] sm:$0xff]  ;;  %1381 = vmatpush.msrb.mxu2 %v810_v50  ;;  %v571_v49 = vld [vmem:[#allocation8 + $0x518] sm:$0xff] }
 0x15a   :  { %v666_v52 = vld [vmem:[#allocation8 + $0x810] sm:$0xff]  ;;  %1401 = vmatpush.msrb.mxu3 %v874_v51  ;;  %v635_v50 = vld [vmem:[#allocation8 + $0x718] sm:$0xff] }
 0x15b   :  { %v730_v53 = vld [vmem:[#allocation8 + $0xa10] sm:$0xff]  ;;  %1345 = vmatpush.msrb.mxu0 %v666_v52  ;;  %v427_v51 = vld [vmem:[#allocation8 + $0x98] sm:$0xff] }
 0x15c   :  { %v806_v54 = vld [vmem:[#allocation8 + $0xc70] sm:$0xff]  ;;  %1365 = vmatpush.msrb.mxu1 %v730_v53  ;;  %1346 = vmatmul.f32.vlgmr.msrb.gmra.mxu0 %v1840_v21  ;;  %v491_v52 = vld [vmem:[#allocation8 + $0x298] sm:$0xff] }
 0x15d   :  { %v870_v55 = vld [vmem:[#allocation8 + $0xe70] sm:$0xff]  ;;  %1382 = vmatpush.msrb.mxu2 %v806_v54  ;;  %1366 = vmatmul.f32.vlgmr.msrb.gmra.mxu1 %v1842_v24  ;;  %v567_v53 = vld [vmem:[#allocation8 + $0x4f8] sm:$0xff] }
 0x15e   :  { %1402 = vmatpush.msrb.mxu3 %v870_v55  ;;  %v802_v58 = vld [vmem:[#allocation8 + $0xc50] sm:$0xff]  ;;  %1410 = vmatpush.msra.mxu0 %v471_v56  ;;  %v631_v54 = vld [vmem:[#allocation8 + $0x6f8] sm:$0xff]  ;;  %v988_v55 = vadd.f32 %v987_v48, %v968_v45 }
 0x15f   :  { %v866_v59 = vld [vmem:[#allocation8 + $0xe50] sm:$0xff]  ;;  %1430 = vmatpush.msra.mxu1 %v535_v57  ;;  %1383 = vmatpush.msrb.mxu2 %v802_v58  ;;  %v423_v56 = vld [vmem:[#allocation8 + $0x78] sm:$0xff]  ;;  %v1007_v58 = vpop.f32.mrf.mxu3 }
 0x160   :  { %v798_v62 = vld [vmem:[#allocation8 + $0xc30] sm:$0xff]  ;;  %1403 = vmatpush.msrb.mxu3 %v866_v59  ;;  %1411 = vmatpush.msra.mxu0 %v467_v60  ;;  %v487_v57 = vld [vmem:[#allocation8 + $0x278] sm:$0xff] }
 0x161   :  { %v862_v63 = vld [vmem:[#allocation8 + $0xe30] sm:$0xff]  ;;  %1431 = vmatpush.msra.mxu1 %v531_v61  ;;  %1384 = vmatpush.msrb.mxu2 %v798_v62  ;;  %v563_v59 = vld [vmem:[#allocation8 + $0x4d8] sm:$0xff] }
 0x162   :  { %v794_v4 = vld [vmem:[#allocation8 + $0xc10] sm:$0xff]  ;;  %1404 = vmatpush.msrb.mxu3 %v862_v63  ;;  %1412 = vmatpush.msra.mxu0 %v463_v1  ;;  %v627_v60 = vld [vmem:[#allocation8 + $0x6d8] sm:$0xff] }
 0x163   :  { %v858_v5 = vld [vmem:[#allocation8 + $0xe10] sm:$0xff]  ;;  %1432 = vmatpush.msra.mxu1 %v527_v3  ;;  %1385 = vmatpush.msrb.mxu2 %v794_v4  ;;  %v419_v61 = vld [vmem:[#allocation8 + $0x58] sm:$0xff]  ;;  %v1027_v3 = vpop.f32.mrf.mxu0  ;;  %v1008_v4 = vadd.f32 %v1007_v58, %v988_v55  ;;  %v923_v55 = vperm.slane %v1870_v0, 1 }
 0x164   :  { %1405 = vmatpush.msrb.mxu3 %v858_v5  ;;  %1386 = vmatmul.f32.vlgmr.msrb.gmra.mxu2 %v1848_v42  ;;  %v483_v62 = vld [vmem:[#allocation8 + $0x258] sm:$0xff] }
 0x165   :  { %1406 = vmatmul.f32.vlgmr.msrb.gmra.mxu3 %v1850_v43  ;;  %1413 = vmatpush.msra.mxu0 %v459_v6  ;;  %v559_v63 = vld [vmem:[#allocation8 + $0x4b8] sm:$0xff] }
 0x166   :  { %1433 = vmatpush.msra.mxu1 %v523_v7  ;;  %1450 = vmatpush.msra.mxu2 %v599_v8  ;;  %v623_v1 = vld [vmem:[#allocation8 + $0x6b8] sm:$0xff] }
 0x167   :  { %1470 = vmatpush.msra.mxu3 %v663_v11  ;;  %1414 = vmatpush.msra.mxu0 %v455_v12  ;;  %v415_v5 = vld [vmem:[#allocation8 + $0x38] sm:$0xff] }
 0x168   :  { %1434 = vmatpush.msra.mxu1 %v519_v13  ;;  %1451 = vmatpush.msra.mxu2 %v595_v14  ;;  %v479_v6 = vld [vmem:[#allocation8 + $0x238] sm:$0xff]  ;;  %v1028_v13 = vadd.f32 %v1027_v3, %v1008_v4  ;;  %v1087_v34 = vpop.f32.mrf.mxu3 }
 0x169   :  { %1471 = vmatpush.msra.mxu3 %v659_v15  ;;  %1415 = vmatpush.msra.mxu0 %v451_v16  ;;  %v555_v7 = vld [vmem:[#allocation8 + $0x498] sm:$0xff] }
 0x16a   :  { %1435 = vmatpush.msra.mxu1 %v515_v17  ;;  %1452 = vmatpush.msra.mxu2 %v591_v18  ;;  %v619_v8 = vld [vmem:[#allocation8 + $0x698] sm:$0xff]  ;;  %v1047_v18 = vpop.f32.mrf.mxu1 }
 0x16b   :  { %1472 = vmatpush.msra.mxu3 %v655_v19  ;;  %1416 = vmatpush.msra.mxu0 %v447_v25  ;;  %v411_v11 = vld [vmem:[#allocation8 + $0x18] sm:$0xff]  ;;  %v1048_v19 = vadd.f32 %v1047_v18, %v1028_v13  ;;  %v1107_v58 = vpop.f32.mrf.mxu0 }
 0x16c   :  { %1436 = vmatpush.msra.mxu1 %v511_v26  ;;  %1453 = vmatpush.msra.mxu2 %v587_v28  ;;  %v475_v12 = vld [vmem:[#allocation8 + $0x218] sm:$0xff]  ;;  %v1067_v28 = vpop.f32.mrf.mxu2  ;;  %v1108_v3 = vadd.f32 %v1107_v58, %v923_v55 }
 0x16d   :  { %1473 = vmatpush.msra.mxu3 %v651_v29  ;;  %1417 = vmatpush.msra.mxu0 %v443_v30  ;;  %v551_v14 = vld [vmem:[#allocation8 + $0x478] sm:$0xff] }
 0x16e   :  { %1437 = vmatpush.msra.mxu1 %v507_v31  ;;  %1454 = vmatpush.msra.mxu2 %v583_v32  ;;  %v615_v15 = vld [vmem:[#allocation8 + $0x678] sm:$0xff]  ;;  %v1068_v31 = vadd.f32 %v1067_v28, %v1048_v19 }
 0x16f   :  { %1474 = vmatpush.msra.mxu3 %v647_v33  ;;  %1418 = vmatpush.msra.mxu0 %v439_v35  ;;  %v727_v16 = vld [vmem:[#allocation8 + $0x9f8] sm:$0xff] }
 0x170   :  { %1438 = vmatpush.msra.mxu1 %v503_v36  ;;  %1455 = vmatpush.msra.mxu2 %v579_v38  ;;  %v791_v17 = vld [vmem:[#allocation8 + $0xbf8] sm:$0xff] }
 0x171   :  { %1475 = vmatpush.msra.mxu3 %v643_v39  ;;  %1419 = vmatpush.msra.mxu0 %v435_v2  ;;  %v547_v20 = vld [vmem:[#allocation8 + $0x458] sm:$0xff] }
 0x172   :  { %1439 = vmatpush.msra.mxu1 %v499_v40  ;;  %1456 = vmatpush.msra.mxu2 %v575_v41  ;;  %v611_v25 = vld [vmem:[#allocation8 + $0x658] sm:$0xff] }
 0x173   :  { %1476 = vmatpush.msra.mxu3 %v639_v44  ;;  %1420 = vmatpush.msra.mxu0 %v431_v46  ;;  %v723_v26 = vld [vmem:[#allocation8 + $0x9d8] sm:$0xff] }
 0x174   :  { %1440 = vmatpush.msra.mxu1 %v495_v47  ;;  %1457 = vmatpush.msra.mxu2 %v571_v49  ;;  %v787_v27 = vld [vmem:[#allocation8 + $0xbd8] sm:$0xff]  ;;  %v1147_v13 = vpop.f32.mrf.mxu2 }
 0x175   :  { %1477 = vmatpush.msra.mxu3 %v635_v50  ;;  %1421 = vmatpush.msra.mxu0 %v427_v51  ;;  %v543_v29 = vld [vmem:[#allocation8 + $0x438] sm:$0xff] }
 0x176   :  { %1441 = vmatpush.msra.mxu1 %v491_v52  ;;  %1458 = vmatpush.msra.mxu2 %v567_v53  ;;  %v607_v30 = vld [vmem:[#allocation8 + $0x638] sm:$0xff] }
 0x177   :  { %1478 = vmatpush.msra.mxu3 %v631_v54  ;;  %1422 = vmatpush.msra.mxu0 %v423_v56  ;;  %v719_v32 = vld [vmem:[#allocation8 + $0x9b8] sm:$0xff] }
 0x178   :  { %1442 = vmatpush.msra.mxu1 %v487_v57  ;;  %1459 = vmatpush.msra.mxu2 %v563_v59  ;;  %v783_v33 = vld [vmem:[#allocation8 + $0xbb8] sm:$0xff] }
 0x179   :  { %1479 = vmatpush.msra.mxu3 %v627_v60  ;;  %1423 = vmatpush.msra.mxu0 %v419_v61  ;;  %v539_v35 = vld [vmem:[#allocation8 + $0x418] sm:$0xff] }
 0x17a   :  { %1443 = vmatpush.msra.mxu1 %v483_v62  ;;  %1460 = vmatpush.msra.mxu2 %v559_v63  ;;  %v603_v36 = vld [vmem:[#allocation8 + $0x618] sm:$0xff] }
 0x17b   :  { %1480 = vmatpush.msra.mxu3 %v623_v1  ;;  %1424 = vmatpush.msra.mxu0 %v415_v5  ;;  %v779_v37 = vld [vmem:[#allocation8 + $0xb98] sm:$0xff] }
 0x17c   :  { %1444 = vmatpush.msra.mxu1 %v479_v6  ;;  %1461 = vmatpush.msra.mxu2 %v555_v7  ;;  %v855_v38 = vld [vmem:[#allocation8 + $0xdf8] sm:$0xff] }
 0x17d   :  { %1481 = vmatpush.msra.mxu3 %v619_v8  ;;  %1425 = vmatpush.msra.mxu0 %v411_v11  ;;  %v919_v39 = vld [vmem:[#allocation8 + $0xff8] sm:$0xff] }
 0x17e   :  { %1445 = vmatpush.msra.mxu1 %v475_v12  ;;  %1462 = vmatpush.msra.mxu2 %v551_v14  ;;  %v711_v2 = vld [vmem:[#allocation8 + $0x978] sm:$0xff]  ;;  %v1127_v12 = vpop.f32.mrf.mxu1 }
 0x17f   :  { %1482 = vmatpush.msra.mxu3 %v615_v15  ;;  %1426 = vmatmul.f32.vlgmr.msra.gmra.mxu0 %v1824_v9  ;;  %v1088_v9 = vadd.f32 %v1087_v34, %v1068_v31  ;;  %v775_v40 = vld [vmem:[#allocation8 + $0xb78] sm:$0xff] }
 0x180   :  { %1446 = vmatmul.f32.vlgmr.msra.gmra.mxu1 %v1826_v10  ;;  %1490 = vmatpush.msrb.mxu0 %v727_v16  ;;  %v715_v10 = vld [vmem:[#allocation8 + $0x998] sm:$0xff]  ;;  %v1128_v16 = vadd.f32 %v1127_v12, %v1108_v3 }
 0x181   :  { %1510 = vmatpush.msrb.mxu1 %v791_v17  ;;  %1463 = vmatpush.msra.mxu2 %v547_v20  ;;  %1570 = vst [vmem:[#allocation11] sm:$0xff] %v1088_v9  ;;  %v851_v41 = vld [vmem:[#allocation8 + $0xdd8] sm:$0xff] }
 0x182   :  { %1483 = vmatpush.msra.mxu3 %v611_v25  ;;  %1491 = vmatpush.msrb.mxu0 %v723_v26  ;;  %v915_v44 = vld [vmem:[#allocation8 + $0xfd8] sm:$0xff]  ;;  %v1148_v25 = vadd.f32 %v1147_v13, %v1128_v16 }
 0x183   :  { %1511 = vmatpush.msrb.mxu1 %v787_v27  ;;  %1464 = vmatpush.msra.mxu2 %v543_v29  ;;  %v707_v45 = vld [vmem:[#allocation8 + $0x958] sm:$0xff] }
 0x184   :  { %1484 = vmatpush.msra.mxu3 %v607_v30  ;;  %1492 = vmatpush.msrb.mxu0 %v719_v32  ;;  %v771_v46 = vld [vmem:[#allocation8 + $0xb58] sm:$0xff]  ;;  %v1167_v32 = vpop.f32.mrf.mxu3 }
 0x185   :  { %1512 = vmatpush.msrb.mxu1 %v783_v33  ;;  %1465 = vmatpush.msra.mxu2 %v539_v35  ;;  %v847_v47 = vld [vmem:[#allocation8 + $0xdb8] sm:$0xff] }
 0x186   :  { %1485 = vmatpush.msra.mxu3 %v603_v36  ;;  %1466 = vmatmul.f32.vlgmr.msra.gmra.mxu2 %v1832_v22  ;;  %v911_v48 = vld [vmem:[#allocation8 + $0xfb8] sm:$0xff]  ;;  %v1168_v36 = vadd.f32 %v1167_v32, %v1148_v25 }
 0x187   :  { %1486 = vmatmul.f32.vlgmr.msra.gmra.mxu3 %v1834_v23  ;;  %1493 = vmatpush.msrb.mxu0 %v715_v10  ;;  %v703_v49 = vld [vmem:[#allocation8 + $0x938] sm:$0xff] }
 0x188   :  { %1513 = vmatpush.msrb.mxu1 %v779_v37  ;;  %1530 = vmatpush.msrb.mxu2 %v855_v38  ;;  %v767_v22 = vld [vmem:[#allocation8 + $0xb38] sm:$0xff] }
 0x189   :  { %1550 = vmatpush.msrb.mxu3 %v919_v39  ;;  %1494 = vmatpush.msrb.mxu0 %v711_v2  ;;  %v843_v23 = vld [vmem:[#allocation8 + $0xd98] sm:$0xff]  ;;  %v1187_v35 = vpop.f32.mrf.mxu0 }
 0x18a   :  { %1514 = vmatpush.msrb.mxu1 %v775_v40  ;;  %1531 = vmatpush.msrb.mxu2 %v851_v41  ;;  %v907_v50 = vld [vmem:[#allocation8 + $0xf98] sm:$0xff]  ;;  %v1188_v39 = vadd.f32 %v1187_v35, %v1168_v36  ;;  %v1207_v41 = vpop.f32.mrf.mxu1 }
 0x18b   :  { %1551 = vmatpush.msrb.mxu3 %v915_v44  ;;  %1495 = vmatpush.msrb.mxu0 %v707_v45  ;;  %v699_v51 = vld [vmem:[#allocation8 + $0x918] sm:$0xff] }
 0x18c   :  { %1515 = vmatpush.msrb.mxu1 %v771_v46  ;;  %1532 = vmatpush.msrb.mxu2 %v847_v47  ;;  %v763_v52 = vld [vmem:[#allocation8 + $0xb18] sm:$0xff]  ;;  %v1208_v46 = vadd.f32 %v1207_v41, %v1188_v39 }
 0x18d   :  { %1552 = vmatpush.msrb.mxu3 %v911_v48  ;;  %1496 = vmatpush.msrb.mxu0 %v703_v49  ;;  %v839_v53 = vld [vmem:[#allocation8 + $0xd78] sm:$0xff] }
 0x18e   :  { %1516 = vmatpush.msrb.mxu1 %v767_v22  ;;  %v903_v54 = vld [vmem:[#allocation8 + $0xf78] sm:$0xff]  ;;  %1533 = vmatpush.msrb.mxu2 %v843_v23 }
 0x18f   :  { %1553 = vmatpush.msrb.mxu3 %v907_v50  ;;  %v695_v56 = vld [vmem:[#allocation8 + $0x8f8] sm:$0xff]  ;;  %1497 = vmatpush.msrb.mxu0 %v699_v51 }
 0x190   :  { %v759_v57 = vld [vmem:[#allocation8 + $0xaf8] sm:$0xff]  ;;  %1517 = vmatpush.msrb.mxu1 %v763_v52  ;;  %1534 = vmatpush.msrb.mxu2 %v839_v53 }
 0x191   :  { %v835_v59 = vld [vmem:[#allocation8 + $0xd58] sm:$0xff]  ;;  %1554 = vmatpush.msrb.mxu3 %v903_v54  ;;  %1498 = vmatpush.msrb.mxu0 %v695_v56 }
 0x192   :  { %v899_v60 = vld [vmem:[#allocation8 + $0xf58] sm:$0xff]  ;;  %1518 = vmatpush.msrb.mxu1 %v759_v57  ;;  %1535 = vmatpush.msrb.mxu2 %v835_v59 }
 0x193   :  { %v691_v61 = vld [vmem:[#allocation8 + $0x8d8] sm:$0xff]  ;;  %1555 = vmatpush.msrb.mxu3 %v899_v60 }
 0x194   :  { %v755_v62 = vld [vmem:[#allocation8 + $0xad8] sm:$0xff]  ;;  %1499 = vmatpush.msrb.mxu0 %v691_v61 }
 0x195   :  { %v831_v63 = vld [vmem:[#allocation8 + $0xd38] sm:$0xff]  ;;  %1519 = vmatpush.msrb.mxu1 %v755_v62 }
 0x196   :  { %v895_v1 = vld [vmem:[#allocation8 + $0xf38] sm:$0xff]  ;;  %1536 = vmatpush.msrb.mxu2 %v831_v63 }
 0x197   :  { %v687_v4 = vld [vmem:[#allocation8 + $0x8b8] sm:$0xff]  ;;  %1556 = vmatpush.msrb.mxu3 %v895_v1  ;;  %v1227_v49 = vpop.f32.mrf.mxu2 }
 0x198   :  { %v751_v5 = vld [vmem:[#allocation8 + $0xab8] sm:$0xff]  ;;  %1500 = vmatpush.msrb.mxu0 %v687_v4  ;;  %v1228_v22 = vadd.f32 %v1227_v49, %v1208_v46  ;;  %v1247_v23 = vpop.f32.mrf.mxu3 }
 0x199   :  { %v827_v6 = vld [vmem:[#allocation8 + $0xd18] sm:$0xff]  ;;  %1520 = vmatpush.msrb.mxu1 %v751_v5 }
 0x19a   :  { %v891_v7 = vld [vmem:[#allocation8 + $0xf18] sm:$0xff]  ;;  %1537 = vmatpush.msrb.mxu2 %v827_v6  ;;  %v1248_v50 = vadd.f32 %v1247_v23, %v1228_v22 }
 0x19b   :  { %v683_v8 = vld [vmem:[#allocation8 + $0x898] sm:$0xff]  ;;  %1557 = vmatpush.msrb.mxu3 %v891_v7 }
 0x19c   :  { %v747_v11 = vld [vmem:[#allocation8 + $0xa98] sm:$0xff]  ;;  %1501 = vmatpush.msrb.mxu0 %v683_v8  ;;  %1571 = vst [vmem:[#allocation11 + $0x8] sm:$0xff] %v1248_v50 }
 0x19d   :  { %v823_v14 = vld [vmem:[#allocation8 + $0xcf8] sm:$0xff]  ;;  %1521 = vmatpush.msrb.mxu1 %v747_v11 }
 0x19e   :  { %v887_v15 = vld [vmem:[#allocation8 + $0xef8] sm:$0xff]  ;;  %1538 = vmatpush.msrb.mxu2 %v823_v14 }
 0x19f   :  { %v679_v17 = vld [vmem:[#allocation8 + $0x878] sm:$0xff]  ;;  %1558 = vmatpush.msrb.mxu3 %v887_v15 }
 0x1a0   :  { %v743_v18 = vld [vmem:[#allocation8 + $0xa78] sm:$0xff]  ;;  %1502 = vmatpush.msrb.mxu0 %v679_v17 }
 0x1a1   :  { %v819_v19 = vld [vmem:[#allocation8 + $0xcd8] sm:$0xff]  ;;  %1522 = vmatpush.msrb.mxu1 %v743_v18 }
 0x1a2   :  { %v883_v20 = vld [vmem:[#allocation8 + $0xed8] sm:$0xff]  ;;  %1539 = vmatpush.msrb.mxu2 %v819_v19 }
 0x1a3   :  { %v675_v26 = vld [vmem:[#allocation8 + $0x858] sm:$0xff]  ;;  %1559 = vmatpush.msrb.mxu3 %v883_v20 }
 0x1a4   :  { %v739_v27 = vld [vmem:[#allocation8 + $0xa58] sm:$0xff]  ;;  %1503 = vmatpush.msrb.mxu0 %v675_v26 }
 0x1a5   :  { %v815_v28 = vld [vmem:[#allocation8 + $0xcb8] sm:$0xff]  ;;  %1523 = vmatpush.msrb.mxu1 %v739_v27 }
 0x1a6   :  { %v879_v29 = vld [vmem:[#allocation8 + $0xeb8] sm:$0xff]  ;;  %1540 = vmatpush.msrb.mxu2 %v815_v28 }
 0x1a7   :  { %v671_v30 = vld [vmem:[#allocation8 + $0x838] sm:$0xff]  ;;  %1560 = vmatpush.msrb.mxu3 %v879_v29 }
 0x1a8   :  { %v735_v31 = vld [vmem:[#allocation8 + $0xa38] sm:$0xff]  ;;  %1504 = vmatpush.msrb.mxu0 %v671_v30 }
 0x1a9   :  { %v811_v33 = vld [vmem:[#allocation8 + $0xc98] sm:$0xff]  ;;  %1524 = vmatpush.msrb.mxu1 %v735_v31 }
 0x1aa   :  { %v875_v34 = vld [vmem:[#allocation8 + $0xe98] sm:$0xff]  ;;  %1541 = vmatpush.msrb.mxu2 %v811_v33 }
 0x1ab   :  { %v667_v9 = vld [vmem:[#allocation8 + $0x818] sm:$0xff]  ;;  %1561 = vmatpush.msrb.mxu3 %v875_v34 }
 0x1ac   :  { %v731_v10 = vld [vmem:[#allocation8 + $0xa18] sm:$0xff]  ;;  %1505 = vmatpush.msrb.mxu0 %v667_v9 }
 0x1ad   :  { %v807_v37 = vld [vmem:[#allocation8 + $0xc78] sm:$0xff]  ;;  %1525 = vmatpush.msrb.mxu1 %v731_v10  ;;  %1506 = vmatmul.f32.vlgmr.msrb.gmra.mxu0 %v1840_v21  ;;  %v924_v21 = vperm.slane %v1870_v0, 2  ;;  %v1287_v52 = vpop.f32.mrf.mxu1 }
 0x1ae   :  { %v871_v38 = vld [vmem:[#allocation8 + $0xe78] sm:$0xff]  ;;  %1542 = vmatpush.msrb.mxu2 %v807_v37  ;;  %1526 = vmatmul.f32.vlgmr.msrb.gmra.mxu1 %v1842_v24  ;;  %v1267_v24 = vpop.f32.mrf.mxu0 }
 0x1af   :  { %v803_v2 = vld [vmem:[#allocation8 + $0xc58] sm:$0xff]  ;;  %1562 = vmatpush.msrb.mxu3 %v871_v38  ;;  %v1268_v51 = vadd.f32 %v1267_v24, %v924_v21 }
 0x1b0   :  { %v867_v40 = vld [vmem:[#allocation8 + $0xe58] sm:$0xff]  ;;  %1543 = vmatpush.msrb.mxu2 %v803_v2 }
 0x1b1   :  { %v799_v44 = vld [vmem:[#allocation8 + $0xc38] sm:$0xff]  ;;  %1563 = vmatpush.msrb.mxu3 %v867_v40  ;;  %v1288_v54 = vadd.f32 %v1287_v52, %v1268_v51 }
 0x1b2   :  { %v863_v45 = vld [vmem:[#allocation8 + $0xe38] sm:$0xff]  ;;  %1544 = vmatpush.msrb.mxu2 %v799_v44 }
 0x1b3   :  { %v795_v47 = vld [vmem:[#allocation8 + $0xc18] sm:$0xff]  ;;  %1564 = vmatpush.msrb.mxu3 %v863_v45 }
 0x1b4   :  { %v859_v48 = vld [vmem:[#allocation8 + $0xe18] sm:$0xff]  ;;  %1545 = vmatpush.msrb.mxu2 %v795_v47 }
 0x1b5   :  { %1565 = vmatpush.msrb.mxu3 %v859_v48  ;;  %1546 = vmatmul.f32.vlgmr.msrb.gmra.mxu2 %v1848_v42 }
 0x1b6   :  { %1566 = vmatmul.f32.vlgmr.msrb.gmra.mxu3 %v1850_v43  ;;  %v925_v43 = vperm.slane %v1870_v0, 3 }
 0x1b9   :  { %v1307_v53 = vpop.f32.mrf.mxu2 }
 0x1ba   :  { %v1308_v55 = vadd.f32 %v1307_v53, %v1288_v54  ;;  %v1327_v56 = vpop.f32.mrf.mxu3 }
 0x1bc   :  { %v1328_v58 = vadd.f32 %v1327_v56, %v1308_v55 }
 0x1d9   :  { %v1347_v57 = vpop.f32.mrf.mxu0 }
 0x1da   :  { %v1348_v59 = vadd.f32 %v1347_v57, %v1328_v58  ;;  %v1367_v60 = vpop.f32.mrf.mxu1 }
 0x1dc   :  { %v1368_v61 = vadd.f32 %v1367_v60, %v1348_v59 }
 0x1e7   :  { %v1387_v62 = vpop.f32.mrf.mxu2 }
 0x1e8   :  { %v1388_v63 = vadd.f32 %v1387_v62, %v1368_v61  ;;  %v1407_v42 = vpop.f32.mrf.mxu3 }
 0x1ea   :  { %v1408_v1 = vadd.f32 %v1407_v42, %v1388_v63 }
 0x1ec   :  { %1572 = vst [vmem:[#allocation11 + $0x10] sm:$0xff] %v1408_v1 }
 0x1fc   :  { %v1427_v3 = vpop.f32.mrf.mxu0 }
 0x1fd   :  { %v1428_v4 = vadd.f32 %v1427_v3, %v925_v43  ;;  %v1447_v5 = vpop.f32.mrf.mxu1 }
 0x1ff   :  { %v1448_v7 = vadd.f32 %v1447_v5, %v1428_v4 }
 0x209   :  { %v1467_v6 = vpop.f32.mrf.mxu2 }
 0x20a   :  { %v1468_v8 = vadd.f32 %v1467_v6, %v1448_v7  ;;  %v1487_v11 = vpop.f32.mrf.mxu3 }
 0x20c   :  { %v1488_v13 = vadd.f32 %v1487_v11, %v1468_v8 }
 0x22a   :  { %v1507_v12 = vpop.f32.mrf.mxu0 }
 0x22b   :  { %v1508_v14 = vadd.f32 %v1507_v12, %v1488_v13  ;;  %v1527_v15 = vpop.f32.mrf.mxu1 }
 0x22d   :  { %v1528_v16 = vadd.f32 %v1527_v15, %v1508_v14 }
 0x238   :  { %v1547_v17 = vpop.f32.mrf.mxu2 }
 0x239   :  { %v1548_v0 = vadd.f32 %v1547_v17, %v1528_v16  ;;  %v1567_v18 = vpop.f32.mrf.mxu3 }
 0x23b   :  { %v1568_v19 = vadd.f32 %v1567_v18, %v1548_v0 }
 0x23d   :  { %1573 = vst [vmem:[#allocation11 + $0x18] sm:$0xff] %v1568_v19 }
 0x23e   :  { %1584 = dma.vmem_to_hbm [thread:$0]  %s1580_s4, 512, %s1582_s21, [#allocation4]  }
 0x23f   :  { %1753 = dma.done.wait [#allocation4], 512  }
 0x240   :  { %1754 = vsyncadd [#allocation4], 4294966784 }
 0x241   :  { %1589 = vsyncpa [#allocation3], 1 }
 0x242   :  { %1590 = vsyncpa [#allocation6], 1 }
 0x243   :  { %1591 = vsyncpa [#allocation9], 1 }
 0x244   :  { %1592 = vsyncpa [#allocation4], 1 }

</bundles_post_ra>
